<compile_context>
chip_gen: v5e
topology: v5e:2x2
jax: 0.10.0
libtpu: 0.0.40
codegen_flags: <defaults>
</compile_context>

<pallas_src>
import functools

import jax
import jax.numpy as jnp
from jax import lax
from jax.experimental import pallas as pl
from jax.experimental.pallas import tpu as pltpu


def _round_up(x: int, m: int) -> int:
    return ((x + m - 1) // m) * m


def ugrnn_seq_kernel(x_ref, wx_ref, wh_ref, b_ref, wfc_ref, bfc_ref,
                     out_ref, gx_sc):
    """One grid step = the FULL sequence for one batch tile.

    x_ref   : (T, BT, IN)      bf16   all timesteps for this batch tile
    wx_ref  : (IN, 2*HP)       bf16   fused [z | h~] input weights
    wh_ref  : (HP, 2*HP)       bf16   fused [z | h~] hidden weights
    b_ref   : (1, 2*HP)        f32    fused bias
    wfc_ref : (HP, CP)         bf16   final classifier weights
    bfc_ref : (1, CP)          f32    classifier bias
    out_ref : (BT, CP)         f32    logits for this batch tile
    gx_sc   : (T, BT, 2*HP)    f32    precomputed input-gate pre-activations
    """
    seq_len, bt, in_sz = x_ref.shape
    hid_p = wh_ref.shape[0]

    # ---- 1) Input projection for ALL timesteps in one big matmul (off the
    #         serial recurrence path); bias folded in once here.
    x_all = x_ref[...].reshape(seq_len * bt, in_sz)                 # bf16
    gx = (jnp.dot(x_all, wx_ref[...], preferred_element_type=jnp.float32)
          + b_ref[...])                                             # (T*BT, 2HP) f32
    gx_sc[...] = gx.reshape(seq_len, bt, 2 * hid_p)

    # ---- 2) Recurrence: only h @ Wh sits on the serial critical path.
    def step(t, h):
        gates = gx_sc[t] + jnp.dot(h.astype(wh_ref.dtype), wh_ref[...],
                                   preferred_element_type=jnp.float32)
        z = jax.nn.sigmoid(gates[:, :hid_p])          # update gate  (EUP)
        h_tilde = jnp.tanh(gates[:, hid_p:])          # candidate    (EUP)
        return h_tilde + z * (h - h_tilde)            # == z*h + (1-z)*h_tilde

    h0 = jnp.zeros((bt, hid_p), jnp.float32)
    h_final = lax.fori_loop(0, seq_len, step, h0, unroll=min(seq_len, 8))

    # ---- 3) Fused classifier head (no extra kernel launch).
    out_ref[...] = (jnp.dot(h_final.astype(wfc_ref.dtype), wfc_ref[...],
                            preferred_element_type=jnp.float32)
                    + bfc_ref[...]).astype(out_ref.dtype)


@functools.partial(jax.jit, static_argnames=("weight_dtype",))
def ugrnn_net_forward(token_ids, emb_table, W_z, b_z, W_h, b_h, W_fc, b_fc,
                      weight_dtype=jnp.bfloat16):
    """Full UGRNNNet forward.  Torch weight layout: W_* is (hid, in+hid)."""
    B, T = token_ids.shape
    in_sz = emb_table.shape[1]
    hid = W_z.shape[0]
    n_cls = W_fc.shape[0]

    hid_p = _round_up(hid, 128)        # lane-dense hidden / gate dims
    cls_p = _round_up(n_cls, 128)      # lane-dense logits

    # Batch: 16-sublane alignment (bf16 packs 16 rows/vreg); tile up to 256
    # rows (MXU M on v6e/v7x). nb >= 2 lets "parallel" shard across v7x cores.
    bsz_p = _round_up(B, 16)
    bt = min(bsz_p, 256)
    bsz_p = _round_up(bsz_p, bt)
    nb = bsz_p // bt

    # ---- embedding lookup (row gather) stays in plain JAX outside the kernel.
    # TODO(synk): move the gather in-kernel via scalar-prefetch + pl.Element
    #             row indexing if the embedding table needs paging from HBM.
    x = jnp.take(emb_table, token_ids, axis=0)              # (B, T, IN) f32
    x = jnp.transpose(x, (1, 0, 2))                          # (T, B, IN)
    x = jnp.pad(x, ((0, 0), (0, bsz_p - B), (0, 0)))
    x = x.astype(weight_dtype)                               # (T, BP, IN) bf16

    # ---- fuse + pad parameters (once per call; ideally once at setup).
    wx = jnp.zeros((in_sz, 2 * hid_p), jnp.float32)
    wx = wx.at[:, :hid].set(W_z[:, :in_sz].T)
    wx = wx.at[:, hid_p:hid_p + hid].set(W_h[:, :in_sz].T)

    wh = jnp.zeros((hid_p, 2 * hid_p), jnp.float32)
    wh = wh.at[:hid, :hid].set(W_z[:, in_sz:].T)
    wh = wh.at[:hid, hid_p:hid_p + hid].set(W_h[:, in_sz:].T)

    b = jnp.zeros((1, 2 * hid_p), jnp.float32)
    b = b.at[0, :hid].set(b_z)
    b = b.at[0, hid_p:hid_p + hid].set(b_h)

    wfc = jnp.zeros((hid_p, cls_p), jnp.float32)
    wfc = wfc.at[:hid, :n_cls].set(W_fc.T)
    bfc = jnp.zeros((1, cls_p), jnp.float32)
    bfc = bfc.at[0, :n_cls].set(b_fc)

    wx = wx.astype(weight_dtype)
    wh = wh.astype(weight_dtype)
    wfc = wfc.astype(weight_dtype)

    const2 = lambda bi: (0, 0)    # weights/biases: same block for every tile

    out = pl.pallas_call(
        ugrnn_seq_kernel,
        out_shape=jax.ShapeDtypeStruct((bsz_p, cls_p), jnp.float32),
        grid_spec=pltpu.PrefetchScalarGridSpec(
            num_scalar_prefetch=0,
            grid=(nb,),
            in_specs=[
                pl.BlockSpec((T, bt, in_sz), lambda bi: (0, bi, 0)),  # x slab
                pl.BlockSpec(wx.shape, const2),
                pl.BlockSpec(wh.shape, const2),
                pl.BlockSpec(b.shape, const2),
                pl.BlockSpec(wfc.shape, const2),
                pl.BlockSpec(bfc.shape, const2),
            ],
            out_specs=pl.BlockSpec((bt, cls_p), lambda bi: (bi, 0)),
            # NOTE: gx_sc scales with T; chunk the time axis (grid=(nb, T//Tc))
            # if T ever grows enough for this to pressure VMEM.
            scratch_shapes=[pltpu.VMEM((T, bt, 2 * hid_p), jnp.float32)],
        ),
        compiler_params=pltpu.CompilerParams(
            dimension_semantics=("parallel",),
        ),
    )(x, wx, wh, b, wfc, bfc)

    return out[:B, :n_cls]


def ugrnn_net_ref(token_ids, emb_table, W_z, b_z, W_h, b_h, W_fc, b_fc):
    """Pure-JAX f32 reference matching the PyTorch module exactly."""
    x = jnp.take(emb_table, token_ids, axis=0)      # (B, T, IN)
    B, T, _ = x.shape
    h = jnp.zeros((B, W_z.shape[0]), jnp.float32)
    for t in range(T):
        comb = jnp.concatenate([x[:, t, :], h], axis=1)
        z = jax.nn.sigmoid(comb @ W_z.T + b_z)
        h_tilde = jnp.tanh(comb @ W_h.T + b_h)
        h = z * h + (1.0 - z) * h_tilde
    return h @ W_fc.T + b_fc


if __name__ == "__main__":
    key = jax.random.PRNGKey(0)
    B, T = 2, 8
    vocab, input_size, hidden_size, num_classes = 16, 4, 32, 4

    keys = jax.random.split(key, 8)
    emb_table = jax.random.normal(keys[0], (vocab, input_size), jnp.float32)

    fan_in = input_size + hidden_size
    bound = 1.0 / jnp.sqrt(jnp.float32(fan_in))
    W_z = jax.random.uniform(keys[1], (hidden_size, fan_in), jnp.float32, -bound, bound)
    b_z = jax.random.uniform(keys[2], (hidden_size,), jnp.float32, -bound, bound)
    W_h = jax.random.uniform(keys[3], (hidden_size, fan_in), jnp.float32, -bound, bound)
    b_h = jax.random.uniform(keys[4], (hidden_size,), jnp.float32, -bound, bound)

    fc_bound = 1.0 / jnp.sqrt(jnp.float32(hidden_size))
    W_fc = jax.random.uniform(keys[5], (num_classes, hidden_size), jnp.float32,
                              -fc_bound, fc_bound)
    b_fc = jax.random.uniform(keys[6], (num_classes,), jnp.float32,
                              -fc_bound, fc_bound)

    tokens = jax.random.randint(keys[7], (B, T), 0, vocab)

    logits = ugrnn_net_forward(tokens, emb_table, W_z, b_z, W_h, b_h, W_fc, b_fc)
    logits = jax.block_until_ready(logits)

    ref = ugrnn_net_ref(tokens, emb_table, W_z, b_z, W_h, b_h, W_fc, b_fc)
    assert logits.shape == (B, num_classes), logits.shape
    # bf16 matmul inputs with f32 accumulation vs the f32 reference: expect
    # ~1e-3..1e-2 absolute error over 8 recurrent steps.
    max_err = float(jnp.max(jnp.abs(logits - ref)))
    assert jnp.allclose(logits, ref, atol=5e-2, rtol=5e-2), f"max abs err {max_err}"

    print("KERNEL_OK")
</pallas_src>

<mosaic_0001>
module attributes {stable_mosaic.version = 11 : i64} {
  func.func @ugrnn_seq_kernel(%arg0: i32, %arg1: memref<8x16x4xbf16, #tpu.memory_space<vmem>>, %arg2: memref<4x256xbf16, #tpu.memory_space<vmem>>, %arg3: memref<128x256xbf16, #tpu.memory_space<vmem>>, %arg4: memref<1x256xf32, #tpu.memory_space<vmem>>, %arg5: memref<128x128xbf16, #tpu.memory_space<vmem>>, %arg6: memref<1x128xf32, #tpu.memory_space<vmem>>, %arg7: memref<16x128xf32, #tpu.memory_space<vmem>>, %arg8: memref<8x16x256xf32, #tpu.memory_space<vmem>>) attributes {dimension_semantics = [#tpu.dimension_semantics<parallel>], iteration_bounds = array<i64: 1>, scalar_prefetch = 0 : i64, scratch_operands = 1 : i64, tpu.core_type = #tpu.core_type<tc>, window_params = [{transform_indices = @transform_0, window_bounds = array<i64: 8, 16, 4>}, {pipeline_mode = #tpu.pipeline_mode<synchronous>, transform_indices = @transform_1, window_bounds = array<i64: 4, 256>}, {pipeline_mode = #tpu.pipeline_mode<synchronous>, transform_indices = @transform_2, window_bounds = array<i64: 128, 256>}, {pipeline_mode = #tpu.pipeline_mode<synchronous>, transform_indices = @transform_3, window_bounds = array<i64: 1, 256>}, {pipeline_mode = #tpu.pipeline_mode<synchronous>, transform_indices = @transform_4, window_bounds = array<i64: 128, 128>}, {pipeline_mode = #tpu.pipeline_mode<synchronous>, transform_indices = @transform_5, window_bounds = array<i64: 1, 128>}, {transform_indices = @transform_6, window_bounds = array<i64: 16, 128>}]} {
    %c0 = arith.constant 0 : index
    %c0_0 = arith.constant 0 : index
    %c0_1 = arith.constant 0 : index
    %0 = vector.load %arg1[%c0, %c0_0, %c0_1] : memref<8x16x4xbf16, #tpu.memory_space<vmem>>, vector<8x16x4xbf16>
    %1 = vector.shape_cast %0 : vector<8x16x4xbf16> to vector<128x4xbf16>
    %c0_2 = arith.constant 0 : index
    %c0_3 = arith.constant 0 : index
    %2 = vector.load %arg2[%c0_2, %c0_3] : memref<4x256xbf16, #tpu.memory_space<vmem>>, vector<4x256xbf16>
    %cst = arith.constant dense<0.000000e+00> : vector<128x256xf32>
    %3 = tpu.matmul %1, %2, %cst {dimension_numbers = #tpu.dot_dimension_numbers<[1], [0], [0], [1], [0, 0, 1, 1], [], []>} : vector<128x4xbf16>, vector<4x256xbf16>, vector<128x256xf32> -> vector<128x256xf32>
    %c0_4 = arith.constant 0 : index
    %c0_5 = arith.constant 0 : index
    %4 = vector.load %arg4[%c0_4, %c0_5] : memref<1x256xf32, #tpu.memory_space<vmem>>, vector<1x256xf32>
    %5 = vector.broadcast %4 : vector<1x256xf32> to vector<128x256xf32>
    %6 = arith.addf %3, %5 : vector<128x256xf32>
    %7 = vector.shape_cast %6 : vector<128x256xf32> to vector<8x16x256xf32>
    %c0_6 = arith.constant 0 : index
    %c0_7 = arith.constant 0 : index
    %c0_8 = arith.constant 0 : index
    %8 = vector.load %arg8[%c0_6, %c0_7, %c0_8] : memref<8x16x256xf32, #tpu.memory_space<vmem>>, vector<8x16x256xf32>
    tpu.vector_store %arg8[%c0_6, %c0_7, %c0_8], %7 {strides = array<i32>} : memref<8x16x256xf32, #tpu.memory_space<vmem>>, vector<8x16x256xf32>,
    %cst_9 = arith.constant 0.000000e+00 : f32
    %9 = vector.broadcast %cst_9 : f32 to vector<16x128xf32>
    %c0_i32 = arith.constant 0 : i32
    %10 = arith.index_cast %c0_i32 : i32 to index
    %c0_10 = arith.constant 0 : index
    %c0_11 = arith.constant 0 : index
    %11 = vector.load %arg8[%10, %c0_10, %c0_11] : memref<8x16x256xf32, #tpu.memory_space<vmem>>, vector<1x16x256xf32>
    %12 = vector.shape_cast %11 : vector<1x16x256xf32> to vector<16x256xf32>
    %13 = arith.truncf %9 : vector<16x128xf32> to vector<16x128xbf16>
    %c0_12 = arith.constant 0 : index
    %c0_13 = arith.constant 0 : index
    %14 = vector.load %arg3[%c0_12, %c0_13] : memref<128x256xbf16, #tpu.memory_space<vmem>>, vector<128x256xbf16>
    %cst_14 = arith.constant dense<0.000000e+00> : vector<16x256xf32>
    %15 = tpu.matmul %13, %14, %cst_14 {dimension_numbers = #tpu.dot_dimension_numbers<[1], [0], [0], [1], [0, 0, 1, 1], [], []>} : vector<16x128xbf16>, vector<128x256xbf16>, vector<16x256xf32> -> vector<16x256xf32>
    %16 = arith.addf %12, %15 : vector<16x256xf32>
    %17 = vector.extract_strided_slice %16 {offsets = [0, 0], sizes = [16, 128], strides = [1, 1]} : vector<16x256xf32> to vector<16x128xf32>
    %18 = arith.negf %17 : vector<16x128xf32>
    %19 = math.exp %18 : vector<16x128xf32>
    %cst_15 = arith.constant 1.000000e+00 : f32
    %20 = vector.broadcast %cst_15 : f32 to vector<16x128xf32>
    %21 = arith.addf %20, %19 : vector<16x128xf32>
    %22 = arith.divf %20, %21 : vector<16x128xf32>
    %23 = vector.extract_strided_slice %16 {offsets = [0, 128], sizes = [16, 128], strides = [1, 1]} : vector<16x256xf32> to vector<16x128xf32>
    %24 = math.tanh %23 : vector<16x128xf32>
    %25 = arith.subf %9, %24 : vector<16x128xf32>
    %26 = arith.mulf %22, %25 : vector<16x128xf32>
    %27 = arith.addf %24, %26 : vector<16x128xf32>
    %c1_i32 = arith.constant 1 : i32
    %28 = arith.index_cast %c1_i32 : i32 to index
    %c0_16 = arith.constant 0 : index
    %c0_17 = arith.constant 0 : index
    %29 = vector.load %arg8[%28, %c0_16, %c0_17] : memref<8x16x256xf32, #tpu.memory_space<vmem>>, vector<1x16x256xf32>
    %30 = vector.shape_cast %29 : vector<1x16x256xf32> to vector<16x256xf32>
    %31 = arith.truncf %27 : vector<16x128xf32> to vector<16x128xbf16>
    %c0_18 = arith.constant 0 : index
    %c0_19 = arith.constant 0 : index
    %32 = vector.load %arg3[%c0_18, %c0_19] : memref<128x256xbf16, #tpu.memory_space<vmem>>, vector<128x256xbf16>
    %cst_20 = arith.constant dense<0.000000e+00> : vector<16x256xf32>
    %33 = tpu.matmul %31, %32, %cst_20 {dimension_numbers = #tpu.dot_dimension_numbers<[1], [0], [0], [1], [0, 0, 1, 1], [], []>} : vector<16x128xbf16>, vector<128x256xbf16>, vector<16x256xf32> -> vector<16x256xf32>
    %34 = arith.addf %30, %33 : vector<16x256xf32>
    %35 = vector.extract_strided_slice %34 {offsets = [0, 0], sizes = [16, 128], strides = [1, 1]} : vector<16x256xf32> to vector<16x128xf32>
    %36 = arith.negf %35 : vector<16x128xf32>
    %37 = math.exp %36 : vector<16x128xf32>
    %cst_21 = arith.constant 1.000000e+00 : f32
    %38 = vector.broadcast %cst_21 : f32 to vector<16x128xf32>
    %39 = arith.addf %38, %37 : vector<16x128xf32>
    %40 = arith.divf %38, %39 : vector<16x128xf32>
    %41 = vector.extract_strided_slice %34 {offsets = [0, 128], sizes = [16, 128], strides = [1, 1]} : vector<16x256xf32> to vector<16x128xf32>
    %42 = math.tanh %41 : vector<16x128xf32>
    %43 = arith.subf %27, %42 : vector<16x128xf32>
    %44 = arith.mulf %40, %43 : vector<16x128xf32>
    %45 = arith.addf %42, %44 : vector<16x128xf32>
    %c2_i32 = arith.constant 2 : i32
    %46 = arith.index_cast %c2_i32 : i32 to index
    %c0_22 = arith.constant 0 : index
    %c0_23 = arith.constant 0 : index
    %47 = vector.load %arg8[%46, %c0_22, %c0_23] : memref<8x16x256xf32, #tpu.memory_space<vmem>>, vector<1x16x256xf32>
    %48 = vector.shape_cast %47 : vector<1x16x256xf32> to vector<16x256xf32>
    %49 = arith.truncf %45 : vector<16x128xf32> to vector<16x128xbf16>
    %c0_24 = arith.constant 0 : index
    %c0_25 = arith.constant 0 : index
    %50 = vector.load %arg3[%c0_24, %c0_25] : memref<128x256xbf16, #tpu.memory_space<vmem>>, vector<128x256xbf16>
    %cst_26 = arith.constant dense<0.000000e+00> : vector<16x256xf32>
    %51 = tpu.matmul %49, %50, %cst_26 {dimension_numbers = #tpu.dot_dimension_numbers<[1], [0], [0], [1], [0, 0, 1, 1], [], []>} : vector<16x128xbf16>, vector<128x256xbf16>, vector<16x256xf32> -> vector<16x256xf32>
    %52 = arith.addf %48, %51 : vector<16x256xf32>
    %53 = vector.extract_strided_slice %52 {offsets = [0, 0], sizes = [16, 128], strides = [1, 1]} : vector<16x256xf32> to vector<16x128xf32>
    %54 = arith.negf %53 : vector<16x128xf32>
    %55 = math.exp %54 : vector<16x128xf32>
    %cst_27 = arith.constant 1.000000e+00 : f32
    %56 = vector.broadcast %cst_27 : f32 to vector<16x128xf32>
    %57 = arith.addf %56, %55 : vector<16x128xf32>
    %58 = arith.divf %56, %57 : vector<16x128xf32>
    %59 = vector.extract_strided_slice %52 {offsets = [0, 128], sizes = [16, 128], strides = [1, 1]} : vector<16x256xf32> to vector<16x128xf32>
    %60 = math.tanh %59 : vector<16x128xf32>
    %61 = arith.subf %45, %60 : vector<16x128xf32>
    %62 = arith.mulf %58, %61 : vector<16x128xf32>
    %63 = arith.addf %60, %62 : vector<16x128xf32>
    %c3_i32 = arith.constant 3 : i32
    %64 = arith.index_cast %c3_i32 : i32 to index
    %c0_28 = arith.constant 0 : index
    %c0_29 = arith.constant 0 : index
    %65 = vector.load %arg8[%64, %c0_28, %c0_29] : memref<8x16x256xf32, #tpu.memory_space<vmem>>, vector<1x16x256xf32>
    %66 = vector.shape_cast %65 : vector<1x16x256xf32> to vector<16x256xf32>
    %67 = arith.truncf %63 : vector<16x128xf32> to vector<16x128xbf16>
    %c0_30 = arith.constant 0 : index
    %c0_31 = arith.constant 0 : index
    %68 = vector.load %arg3[%c0_30, %c0_31] : memref<128x256xbf16, #tpu.memory_space<vmem>>, vector<128x256xbf16>
    %cst_32 = arith.constant dense<0.000000e+00> : vector<16x256xf32>
    %69 = tpu.matmul %67, %68, %cst_32 {dimension_numbers = #tpu.dot_dimension_numbers<[1], [0], [0], [1], [0, 0, 1, 1], [], []>} : vector<16x128xbf16>, vector<128x256xbf16>, vector<16x256xf32> -> vector<16x256xf32>
    %70 = arith.addf %66, %69 : vector<16x256xf32>
    %71 = vector.extract_strided_slice %70 {offsets = [0, 0], sizes = [16, 128], strides = [1, 1]} : vector<16x256xf32> to vector<16x128xf32>
    %72 = arith.negf %71 : vector<16x128xf32>
    %73 = math.exp %72 : vector<16x128xf32>
    %cst_33 = arith.constant 1.000000e+00 : f32
    %74 = vector.broadcast %cst_33 : f32 to vector<16x128xf32>
    %75 = arith.addf %74, %73 : vector<16x128xf32>
    %76 = arith.divf %74, %75 : vector<16x128xf32>
    %77 = vector.extract_strided_slice %70 {offsets = [0, 128], sizes = [16, 128], strides = [1, 1]} : vector<16x256xf32> to vector<16x128xf32>
    %78 = math.tanh %77 : vector<16x128xf32>
    %79 = arith.subf %63, %78 : vector<16x128xf32>
    %80 = arith.mulf %76, %79 : vector<16x128xf32>
    %81 = arith.addf %78, %80 : vector<16x128xf32>
    %c4_i32 = arith.constant 4 : i32
    %82 = arith.index_cast %c4_i32 : i32 to index
    %c0_34 = arith.constant 0 : index
    %c0_35 = arith.constant 0 : index
    %83 = vector.load %arg8[%82, %c0_34, %c0_35] : memref<8x16x256xf32, #tpu.memory_space<vmem>>, vector<1x16x256xf32>
    %84 = vector.shape_cast %83 : vector<1x16x256xf32> to vector<16x256xf32>
    %85 = arith.truncf %81 : vector<16x128xf32> to vector<16x128xbf16>
    %c0_36 = arith.constant 0 : index
    %c0_37 = arith.constant 0 : index
    %86 = vector.load %arg3[%c0_36, %c0_37] : memref<128x256xbf16, #tpu.memory_space<vmem>>, vector<128x256xbf16>
    %cst_38 = arith.constant dense<0.000000e+00> : vector<16x256xf32>
    %87 = tpu.matmul %85, %86, %cst_38 {dimension_numbers = #tpu.dot_dimension_numbers<[1], [0], [0], [1], [0, 0, 1, 1], [], []>} : vector<16x128xbf16>, vector<128x256xbf16>, vector<16x256xf32> -> vector<16x256xf32>
    %88 = arith.addf %84, %87 : vector<16x256xf32>
    %89 = vector.extract_strided_slice %88 {offsets = [0, 0], sizes = [16, 128], strides = [1, 1]} : vector<16x256xf32> to vector<16x128xf32>
    %90 = arith.negf %89 : vector<16x128xf32>
    %91 = math.exp %90 : vector<16x128xf32>
    %cst_39 = arith.constant 1.000000e+00 : f32
    %92 = vector.broadcast %cst_39 : f32 to vector<16x128xf32>
    %93 = arith.addf %92, %91 : vector<16x128xf32>
    %94 = arith.divf %92, %93 : vector<16x128xf32>
    %95 = vector.extract_strided_slice %88 {offsets = [0, 128], sizes = [16, 128], strides = [1, 1]} : vector<16x256xf32> to vector<16x128xf32>
    %96 = math.tanh %95 : vector<16x128xf32>
    %97 = arith.subf %81, %96 : vector<16x128xf32>
    %98 = arith.mulf %94, %97 : vector<16x128xf32>
    %99 = arith.addf %96, %98 : vector<16x128xf32>
    %c5_i32 = arith.constant 5 : i32
    %100 = arith.index_cast %c5_i32 : i32 to index
    %c0_40 = arith.constant 0 : index
    %c0_41 = arith.constant 0 : index
    %101 = vector.load %arg8[%100, %c0_40, %c0_41] : memref<8x16x256xf32, #tpu.memory_space<vmem>>, vector<1x16x256xf32>
    %102 = vector.shape_cast %101 : vector<1x16x256xf32> to vector<16x256xf32>
    %103 = arith.truncf %99 : vector<16x128xf32> to vector<16x128xbf16>
    %c0_42 = arith.constant 0 : index
    %c0_43 = arith.constant 0 : index
    %104 = vector.load %arg3[%c0_42, %c0_43] : memref<128x256xbf16, #tpu.memory_space<vmem>>, vector<128x256xbf16>
    %cst_44 = arith.constant dense<0.000000e+00> : vector<16x256xf32>
    %105 = tpu.matmul %103, %104, %cst_44 {dimension_numbers = #tpu.dot_dimension_numbers<[1], [0], [0], [1], [0, 0, 1, 1], [], []>} : vector<16x128xbf16>, vector<128x256xbf16>, vector<16x256xf32> -> vector<16x256xf32>
    %106 = arith.addf %102, %105 : vector<16x256xf32>
    %107 = vector.extract_strided_slice %106 {offsets = [0, 0], sizes = [16, 128], strides = [1, 1]} : vector<16x256xf32> to vector<16x128xf32>
    %108 = arith.negf %107 : vector<16x128xf32>
    %109 = math.exp %108 : vector<16x128xf32>
    %cst_45 = arith.constant 1.000000e+00 : f32
    %110 = vector.broadcast %cst_45 : f32 to vector<16x128xf32>
    %111 = arith.addf %110, %109 : vector<16x128xf32>
    %112 = arith.divf %110, %111 : vector<16x128xf32>
    %113 = vector.extract_strided_slice %106 {offsets = [0, 128], sizes = [16, 128], strides = [1, 1]} : vector<16x256xf32> to vector<16x128xf32>
    %114 = math.tanh %113 : vector<16x128xf32>
    %115 = arith.subf %99, %114 : vector<16x128xf32>
    %116 = arith.mulf %112, %115 : vector<16x128xf32>
    %117 = arith.addf %114, %116 : vector<16x128xf32>
    %c6_i32 = arith.constant 6 : i32
    %118 = arith.index_cast %c6_i32 : i32 to index
    %c0_46 = arith.constant 0 : index
    %c0_47 = arith.constant 0 : index
    %119 = vector.load %arg8[%118, %c0_46, %c0_47] : memref<8x16x256xf32, #tpu.memory_space<vmem>>, vector<1x16x256xf32>
    %120 = vector.shape_cast %119 : vector<1x16x256xf32> to vector<16x256xf32>
    %121 = arith.truncf %117 : vector<16x128xf32> to vector<16x128xbf16>
    %c0_48 = arith.constant 0 : index
    %c0_49 = arith.constant 0 : index
    %122 = vector.load %arg3[%c0_48, %c0_49] : memref<128x256xbf16, #tpu.memory_space<vmem>>, vector<128x256xbf16>
    %cst_50 = arith.constant dense<0.000000e+00> : vector<16x256xf32>
    %123 = tpu.matmul %121, %122, %cst_50 {dimension_numbers = #tpu.dot_dimension_numbers<[1], [0], [0], [1], [0, 0, 1, 1], [], []>} : vector<16x128xbf16>, vector<128x256xbf16>, vector<16x256xf32> -> vector<16x256xf32>
    %124 = arith.addf %120, %123 : vector<16x256xf32>
    %125 = vector.extract_strided_slice %124 {offsets = [0, 0], sizes = [16, 128], strides = [1, 1]} : vector<16x256xf32> to vector<16x128xf32>
    %126 = arith.negf %125 : vector<16x128xf32>
    %127 = math.exp %126 : vector<16x128xf32>
    %cst_51 = arith.constant 1.000000e+00 : f32
    %128 = vector.broadcast %cst_51 : f32 to vector<16x128xf32>
    %129 = arith.addf %128, %127 : vector<16x128xf32>
    %130 = arith.divf %128, %129 : vector<16x128xf32>
    %131 = vector.extract_strided_slice %124 {offsets = [0, 128], sizes = [16, 128], strides = [1, 1]} : vector<16x256xf32> to vector<16x128xf32>
    %132 = math.tanh %131 : vector<16x128xf32>
    %133 = arith.subf %117, %132 : vector<16x128xf32>
    %134 = arith.mulf %130, %133 : vector<16x128xf32>
    %135 = arith.addf %132, %134 : vector<16x128xf32>
    %c7_i32 = arith.constant 7 : i32
    %136 = arith.index_cast %c7_i32 : i32 to index
    %c0_52 = arith.constant 0 : index
    %c0_53 = arith.constant 0 : index
    %137 = vector.load %arg8[%136, %c0_52, %c0_53] : memref<8x16x256xf32, #tpu.memory_space<vmem>>, vector<1x16x256xf32>
    %138 = vector.shape_cast %137 : vector<1x16x256xf32> to vector<16x256xf32>
    %139 = arith.truncf %135 : vector<16x128xf32> to vector<16x128xbf16>
    %c0_54 = arith.constant 0 : index
    %c0_55 = arith.constant 0 : index
    %140 = vector.load %arg3[%c0_54, %c0_55] : memref<128x256xbf16, #tpu.memory_space<vmem>>, vector<128x256xbf16>
    %cst_56 = arith.constant dense<0.000000e+00> : vector<16x256xf32>
    %141 = tpu.matmul %139, %140, %cst_56 {dimension_numbers = #tpu.dot_dimension_numbers<[1], [0], [0], [1], [0, 0, 1, 1], [], []>} : vector<16x128xbf16>, vector<128x256xbf16>, vector<16x256xf32> -> vector<16x256xf32>
    %142 = arith.addf %138, %141 : vector<16x256xf32>
    %143 = vector.extract_strided_slice %142 {offsets = [0, 0], sizes = [16, 128], strides = [1, 1]} : vector<16x256xf32> to vector<16x128xf32>
    %144 = arith.negf %143 : vector<16x128xf32>
    %145 = math.exp %144 : vector<16x128xf32>
    %cst_57 = arith.constant 1.000000e+00 : f32
    %146 = vector.broadcast %cst_57 : f32 to vector<16x128xf32>
    %147 = arith.addf %146, %145 : vector<16x128xf32>
    %148 = arith.divf %146, %147 : vector<16x128xf32>
    %149 = vector.extract_strided_slice %142 {offsets = [0, 128], sizes = [16, 128], strides = [1, 1]} : vector<16x256xf32> to vector<16x128xf32>
    %150 = math.tanh %149 : vector<16x128xf32>
    %151 = arith.subf %135, %150 : vector<16x128xf32>
    %152 = arith.mulf %148, %151 : vector<16x128xf32>
    %153 = arith.addf %150, %152 : vector<16x128xf32>
    %c8_i32 = arith.constant 8 : i32
    %154 = arith.truncf %153 : vector<16x128xf32> to vector<16x128xbf16>
    %c0_58 = arith.constant 0 : index
    %c0_59 = arith.constant 0 : index
    %155 = vector.load %arg5[%c0_58, %c0_59] : memref<128x128xbf16, #tpu.memory_space<vmem>>, vector<128x128xbf16>
    %cst_60 = arith.constant dense<0.000000e+00> : vector<16x128xf32>
    %156 = tpu.matmul %154, %155, %cst_60 {dimension_numbers = #tpu.dot_dimension_numbers<[1], [0], [0], [1], [0, 0, 1, 1], [], []>} : vector<16x128xbf16>, vector<128x128xbf16>, vector<16x128xf32> -> vector<16x128xf32>
    %c0_61 = arith.constant 0 : index
    %c0_62 = arith.constant 0 : index
    %157 = vector.load %arg6[%c0_61, %c0_62] : memref<1x128xf32, #tpu.memory_space<vmem>>, vector<1x128xf32>
    %158 = vector.broadcast %157 : vector<1x128xf32> to vector<16x128xf32>
    %159 = arith.addf %156, %158 : vector<16x128xf32>
    %c0_63 = arith.constant 0 : index
    %c0_64 = arith.constant 0 : index
    %160 = vector.load %arg7[%c0_63, %c0_64] : memref<16x128xf32, #tpu.memory_space<vmem>>, vector<16x128xf32>
    tpu.vector_store %arg7[%c0_63, %c0_64], %159 {strides = array<i32>} : memref<16x128xf32, #tpu.memory_space<vmem>>, vector<16x128xf32>,
    return
  }
  func.func @transform_0(%arg0: i32) -> (i32, i32, i32) {
    %c0_i32 = arith.constant 0 : i32
    %c0_i32_0 = arith.constant 0 : i32
    %c0_i32_1 = arith.constant 0 : i32
    return %c0_i32, %arg0, %c0_i32_0 : i32, i32, i32
  }
  func.func @transform_1(%arg0: i32) -> (i32, i32) {
    %c0_i32 = arith.constant 0 : i32
    %c0_i32_0 = arith.constant 0 : i32
    %c0_i32_1 = arith.constant 0 : i32
    return %c0_i32, %c0_i32_0 : i32, i32
  }
  func.func @transform_2(%arg0: i32) -> (i32, i32) {
    %c0_i32 = arith.constant 0 : i32
    %c0_i32_0 = arith.constant 0 : i32
    %c0_i32_1 = arith.constant 0 : i32
    return %c0_i32, %c0_i32_0 : i32, i32
  }
  func.func @transform_3(%arg0: i32) -> (i32, i32) {
    %c0_i32 = arith.constant 0 : i32
    %c0_i32_0 = arith.constant 0 : i32
    %c0_i32_1 = arith.constant 0 : i32
    return %c0_i32, %c0_i32_0 : i32, i32
  }
  func.func @transform_4(%arg0: i32) -> (i32, i32) {
    %c0_i32 = arith.constant 0 : i32
    %c0_i32_0 = arith.constant 0 : i32
    %c0_i32_1 = arith.constant 0 : i32
    return %c0_i32, %c0_i32_0 : i32, i32
  }
  func.func @transform_5(%arg0: i32) -> (i32, i32) {
    %c0_i32 = arith.constant 0 : i32
    %c0_i32_0 = arith.constant 0 : i32
    %c0_i32_1 = arith.constant 0 : i32
    return %c0_i32, %c0_i32_0 : i32, i32
  }
  func.func @transform_6(%arg0: i32) -> (i32, i32) {
    %c0_i32 = arith.constant 0 : i32
    %c0_i32_0 = arith.constant 0 : i32
    return %arg0, %c0_i32 : i32, i32
  }
}

</mosaic_0001>

<bundles_post_ra>
// kernel: ugrnn_net_forward.1
= control target key start
LH: loop header
LB: loop body
LE: loop exit
PB: predicated region body
PF: predicated region fallthrough
CT: control target
= control target key end

     0   :  { %vm116_vm0 = vcmask 1041408   ;;  %vm91_vm1 = vcmask 31744   ;;  %v1396_v54 = vmov 0   ;;  %s1887_s2 = inlined_call_operand.vmem [shape: bf16[128,256], index: 2, kind: input, shape index: {}]   ;;  %s1888_s1 = inlined_call_operand.vmem [shape: bf16[4,256], index: 1, kind: input, shape index: {}]   ;;  %s1889_s0 = inlined_call_operand.vmem [shape: bf16[8,16,4], index: 0, kind: input, shape index: {}]   ;;  %s1890_s3 = inlined_call_operand.vmem [shape: f32[1,256], index: 3, kind: input, shape index: {}]   ;;  %s1891_s5 = inlined_call_operand.vmem [shape: f32[1,128], index: 5, kind: input, shape index: {}]   ;;  %s1892_s4 = inlined_call_operand.vmem [shape: bf16[128,128], index: 4, kind: input, shape index: {}]   ;;  %s1893_s6 = inlined_call_operand.vmem [shape: f32[16,128], index: 6, kind: output, shape index: {}]  }
   0x1   :  { %v1212_v0 = vld [vmem:[%s1887_s2 + $0x70] sm:$0xf]  ;;  %v1289_v1 = vld [vmem:[%s1887_s2 + $0x74] sm:$0xf0]  ;;  %v1204_v2 = vld [vmem:[%s1887_s2 + $0x60] sm:$0xf] }
   0x2   :  { %v1441_v3 = vor.u32 %v1289_v1, %v1212_v0  ;;  %v1287_v4 = vld [vmem:[%s1887_s2 + $0x64] sm:$0xf0]  ;;  %v1288_v5 = vld [vmem:[%s1887_s2 + $0x74] sm:$0xf]  ;;  %v1214_v6 = vld [vmem:[%s1887_s2 + $0x78] sm:$0xf0] }
   0x3   :  { %v1453_v7 = vor.u32 %v1287_v4, %v1204_v2  ;;  %v1455_v8 = vor.u32 %v1288_v5, %v1214_v6  ;;  %v1286_v9 = vld [vmem:[%s1887_s2 + $0x64] sm:$0xf]  ;;  %v1206_v10 = vld [vmem:[%s1887_s2 + $0x68] sm:$0xf0]  ;;  %v1196_v11 = vld [vmem:[%s1887_s2 + $0x50] sm:$0xf] }
   0x4   :  { %351 = vmatpush.bf16.msra.mxu2 %v1441_v3  ;;  %v1285_v12 = vld [vmem:[%s1887_s2 + $0x54] sm:$0xf0]  ;;  %v1470_v13 = vor.u32 %v1286_v9, %v1206_v10  ;;  %v1284_v14 = vld [vmem:[%s1887_s2 + $0x54] sm:$0xf]  ;;  %v1198_v15 = vld [vmem:[%s1887_s2 + $0x58] sm:$0xf0] }
   0x5   :  { %365 = vmatpush.bf16.msra.mxu3 %v1455_v8  ;;  %v40_v16 = vld [vmem:[%s1888_s1] sm:$0xf]  ;;  %v1482_v17 = vor.u32 %v1285_v12, %v1196_v11  ;;  %v1283_v19 = vld [vmem:[%s1887_s2 + $0x44] sm:$0xf0]  ;;  %v1491_v20 = vor.u32 %v1284_v14, %v1198_v15  ;;  %v1282_v21 = vld [vmem:[%s1887_s2 + $0x44] sm:$0xf] }
   0x6   :  { %88 = vst [vmem:[#allocation1] ss:$4 sm:$0xff] %v40_v16  ;;  %v1188_v18 = vld [vmem:[%s1887_s2 + $0x40] sm:$0xf]  ;;  %v1190_v22 = vld [vmem:[%s1887_s2 + $0x48] sm:$0xf0] }
   0x7   :  { %v1500_v23 = vor.u32 %v1283_v19, %v1188_v18  ;;  %v1180_v24 = vld [vmem:[%s1887_s2 + $0x30] sm:$0xf]  ;;  %v1281_v25 = vld [vmem:[%s1887_s2 + $0x34] sm:$0xf0]  ;;  %v1509_v26 = vor.u32 %v1282_v21, %v1190_v22  ;;  %v1280_v27 = vld [vmem:[%s1887_s2 + $0x34] sm:$0xf] }
   0x8   :  { %352 = vmatpush.bf16.msra.mxu2 %v1453_v7  ;;  %v1182_v28 = vld [vmem:[%s1887_s2 + $0x38] sm:$0xf0]  ;;  %v1518_v31 = vor.u32 %v1281_v25, %v1180_v24  ;;  %v1266_v33 = vld [vmem:[%s1889_s0] sm:$0xff]  ;;  %v1279_v36 = vld [vmem:[%s1887_s2 + $0x24] sm:$0xf0] }
   0x9   :  { %366 = vmatpush.bf16.msra.mxu3 %v1470_v13  ;;  %v1172_v35 = vld [vmem:[%s1887_s2 + $0x20] sm:$0xf]  ;;  %v1530_v37 = vor.u32 %v1280_v27, %v1182_v28  ;;  %v1278_v38 = vld [vmem:[%s1887_s2 + $0x24] sm:$0xf]  ;;  %v1174_v39 = vld [vmem:[%s1887_s2 + $0x28] sm:$0xf0] }
   0xa   :  { %v1541_v40 = vor.u32 %v1279_v36, %v1172_v35  ;;  %v1164_v41 = vld [vmem:[%s1887_s2 + $0x10] sm:$0xf]  ;;  %v1277_v42 = vld [vmem:[%s1887_s2 + $0x14] sm:$0xf0]  ;;  %v1552_v43 = vor.u32 %v1278_v38, %v1174_v39  ;;  %v1276_v44 = vld [vmem:[%s1887_s2 + $0x14] sm:$0xf] }
   0xb   :  { %v1166_v45 = vld [vmem:[%s1887_s2 + $0x18] sm:$0xf0]  ;;  %v1563_v46 = vor.u32 %v1277_v42, %v1164_v41  ;;  %v1156_v47 = vld [vmem:[%s1887_s2] sm:$0xf]  ;;  %v1275_v48 = vld [vmem:[%s1887_s2 + $0x4] sm:$0xf0] }
   0xc   :  { %353 = vmatpush.bf16.msra.mxu2 %v1482_v17  ;;  %v1572_v49 = vor.u32 %v1276_v44, %v1166_v45  ;;  %v1274_v50 = vld [vmem:[%s1887_s2 + $0x4] sm:$0xf]  ;;  %v1158_v51 = vld [vmem:[%s1887_s2 + $0x8] sm:$0xf0]  ;;  %v1583_v52 = vor.u32 %v1275_v48, %v1156_v47  ;;  %v41_v55 = vld [vmem:[%s1890_s3] sm:$0x3] }
   0xd   :  { %367 = vmatpush.bf16.msra.mxu3 %v1491_v20  ;;  %v89_v29 = vld.sshfl [vmem:[#allocation1] sm:$0xff pattern:$0x73625140]  ;;  %v90_v30 = vld.sshfl [vmem:[#allocation1 + $0x8] sm:$0xff pattern:$0x73625140]  ;;  %v1586_v53 = vor.u32 %v1274_v50, %v1158_v51 }
   0xe   :  { %v117_v32 = vsel %vm116_vm0, %v89_v29, 0  ;;  %v119_v34 = vsel %vm116_vm0, %v90_v30, 0  ;;  %v1651_v56 = vperm.slane %v41_v55, 0  ;;  %v1267_v59 = vld [vmem:[%s1889_s0 + $0x8] sm:$0xff]  ;;  %v1660_v9 = vperm.slane %v41_v55, 1 }
   0xf   :  { %128 = vmatpush.bf16.msra.mxu0 %v117_v32  ;;  %177 = vmatpush.bf16.msra.mxu1 %v119_v34 }
  0x10   :  { %354 = vmatpush.bf16.msra.mxu2 %v1500_v23 }
  0x11   :  { %368 = vmatpush.bf16.msra.mxu3 %v1509_v26 }
  0x12   :  { %1138 = vmatmul.msk.bf16.vlgmr.msra.gmra.mxu0 %vm91_vm1, %v1266_v33  ;;  %1146 = vmatmul.msk.bf16.vlgmr.msra.gmra.mxu1 %vm91_vm1, %v1266_v33 }
  0x13   :  { %687 = vmatpush.bf16.msrb.mxu0 %v1441_v3  ;;  %701 = vmatpush.bf16.msrb.mxu1 %v1455_v8 }
  0x14   :  { %355 = vmatpush.bf16.msra.mxu2 %v1518_v31 }
  0x15   :  { %369 = vmatpush.bf16.msra.mxu3 %v1530_v37 }
  0x17   :  { %688 = vmatpush.bf16.msrb.mxu0 %v1453_v7  ;;  %702 = vmatpush.bf16.msrb.mxu1 %v1470_v13 }
  0x18   :  { %356 = vmatpush.bf16.msra.mxu2 %v1541_v40 }
  0x19   :  { %370 = vmatpush.bf16.msra.mxu3 %v1552_v43 }
  0x1b   :  { %689 = vmatpush.bf16.msrb.mxu0 %v1482_v17  ;;  %703 = vmatpush.bf16.msrb.mxu1 %v1491_v20 }
  0x1c   :  { %357 = vmatpush.bf16.msra.mxu2 %v1563_v46 }
  0x1d   :  { %371 = vmatpush.bf16.msra.mxu3 %v1572_v49 }
  0x1f   :  { %690 = vmatpush.bf16.msrb.mxu0 %v1500_v23  ;;  %704 = vmatpush.bf16.msrb.mxu1 %v1509_v26 }
  0x20   :  { %358 = vmatpush.bf16.msra.mxu2 %v1583_v52 }
  0x21   :  { %372 = vmatpush.bf16.msra.mxu3 %v1586_v53 }
  0x22   :  { %1139 = vmatmul.msk.bf16.gmra.mxu0 %vm91_vm1, %v1267_v59  ;;  %1147 = vmatmul.msk.bf16.gmra.mxu1 %vm91_vm1, %v1267_v59 }
  0x23   :  { %691 = vmatpush.bf16.msrb.mxu0 %v1518_v31  ;;  %359 = vmatmul.bf16.vlgmr.msra.gmra.mxu2 %v1396_v54 }
  0x24   :  { %435 = vmatpush.bf16.msrb.mxu2 %v1441_v3  ;;  %705 = vmatpush.bf16.msrb.mxu1 %v1530_v37 }
  0x25   :  { %449 = vmatpush.bf16.msrb.mxu3 %v1455_v8 }
  0x26   :  { %373 = vmatmul.bf16.vlgmr.msra.gmra.mxu3 %v1396_v54 }
  0x27   :  { %692 = vmatpush.bf16.msrb.mxu0 %v1541_v40 }
  0x28   :  { %436 = vmatpush.bf16.msrb.mxu2 %v1453_v7  ;;  %706 = vmatpush.bf16.msrb.mxu1 %v1552_v43 }
  0x29   :  { %450 = vmatpush.bf16.msrb.mxu3 %v1470_v13 }
  0x2b   :  { %693 = vmatpush.bf16.msrb.mxu0 %v1563_v46 }
  0x2c   :  { %437 = vmatpush.bf16.msrb.mxu2 %v1482_v17  ;;  %707 = vmatpush.bf16.msrb.mxu1 %v1572_v49 }
  0x2d   :  { %451 = vmatpush.bf16.msrb.mxu3 %v1491_v20 }
  0x2f   :  { %694 = vmatpush.bf16.msrb.mxu0 %v1583_v52 }
  0x30   :  { %438 = vmatpush.bf16.msrb.mxu2 %v1500_v23  ;;  %708 = vmatpush.bf16.msrb.mxu1 %v1586_v53 }
  0x31   :  { %452 = vmatpush.bf16.msrb.mxu3 %v1509_v26 }
  0x33   :  { %855 = vmatpush.bf16.msra.mxu0 %v1441_v3 }
  0x34   :  { %439 = vmatpush.bf16.msrb.mxu2 %v1518_v31  ;;  %869 = vmatpush.bf16.msra.mxu1 %v1455_v8 }
  0x35   :  { %453 = vmatpush.bf16.msrb.mxu3 %v1530_v37 }
  0x37   :  { %856 = vmatpush.bf16.msra.mxu0 %v1453_v7 }
  0x38   :  { %440 = vmatpush.bf16.msrb.mxu2 %v1541_v40  ;;  %870 = vmatpush.bf16.msra.mxu1 %v1470_v13 }
  0x39   :  { %454 = vmatpush.bf16.msrb.mxu3 %v1552_v43 }
  0x3b   :  { %857 = vmatpush.bf16.msra.mxu0 %v1482_v17 }
  0x3c   :  { %441 = vmatpush.bf16.msrb.mxu2 %v1563_v46  ;;  %871 = vmatpush.bf16.msra.mxu1 %v1491_v20 }
  0x3d   :  { %455 = vmatpush.bf16.msrb.mxu3 %v1572_v49 }
  0x3f   :  { %858 = vmatpush.bf16.msra.mxu0 %v1500_v23 }
  0x40   :  { %442 = vmatpush.bf16.msrb.mxu2 %v1583_v52  ;;  %872 = vmatpush.bf16.msra.mxu1 %v1509_v26 }
  0x41   :  { %456 = vmatpush.bf16.msrb.mxu3 %v1586_v53 }
  0x43   :  { %859 = vmatpush.bf16.msra.mxu0 %v1518_v31 }
  0x44   :  { %519 = vmatpush.bf16.msra.mxu2 %v1441_v3  ;;  %873 = vmatpush.bf16.msra.mxu1 %v1530_v37 }
  0x45   :  { %533 = vmatpush.bf16.msra.mxu3 %v1455_v8 }
  0x47   :  { %860 = vmatpush.bf16.msra.mxu0 %v1541_v40 }
  0x48   :  { %520 = vmatpush.bf16.msra.mxu2 %v1453_v7  ;;  %874 = vmatpush.bf16.msra.mxu1 %v1552_v43 }
  0x49   :  { %534 = vmatpush.bf16.msra.mxu3 %v1470_v13 }
  0x4b   :  { %861 = vmatpush.bf16.msra.mxu0 %v1563_v46 }
  0x4c   :  { %521 = vmatpush.bf16.msra.mxu2 %v1482_v17  ;;  %875 = vmatpush.bf16.msra.mxu1 %v1572_v49 }
  0x4d   :  { %535 = vmatpush.bf16.msra.mxu3 %v1491_v20 }
  0x4f   :  { %862 = vmatpush.bf16.msra.mxu0 %v1583_v52 }
  0x50   :  { %522 = vmatpush.bf16.msra.mxu2 %v1500_v23  ;;  %876 = vmatpush.bf16.msra.mxu1 %v1586_v53 }
  0x51   :  { %536 = vmatpush.bf16.msra.mxu3 %v1509_v26 }
  0x54   :  { %523 = vmatpush.bf16.msra.mxu2 %v1518_v31 }
  0x55   :  { %537 = vmatpush.bf16.msra.mxu3 %v1530_v37 }
  0x58   :  { %524 = vmatpush.bf16.msra.mxu2 %v1541_v40 }
  0x59   :  { %538 = vmatpush.bf16.msra.mxu3 %v1552_v43 }
  0x5c   :  { %525 = vmatpush.bf16.msra.mxu2 %v1563_v46 }
  0x5d   :  { %539 = vmatpush.bf16.msra.mxu3 %v1572_v49 }
  0x60   :  { %526 = vmatpush.bf16.msra.mxu2 %v1583_v52 }
  0x61   :  { %540 = vmatpush.bf16.msra.mxu3 %v1586_v53 }
  0x8f   :  { %v130_v57 = vpop.f32.mrf.mxu0  ;;  %v179_v1 = vpop.f32.mrf.mxu1 }
  0x90   :  { %v131_v58 = vadd.f32 %v130_v57, %v1651_v56  ;;  %v180_v12 = vadd.f32 %v179_v1, %v1660_v9 }
  0x97   :  { %v132_v63 = vpop.f32.mrf.mxu0  ;;  %v181_v14 = vpop.f32.mrf.mxu1 }
  0x98   :  { %v133_v0 = vadd.f32 %v132_v63, %v1651_v56  ;;  %v182_v21 = vadd.f32 %v181_v14, %v1660_v9 }
  0x9f   :  { %v135_v63 = vpop.f32.mrf.mxu0 }
  0xa6   :  { %v360_v60 = vpop.f32.mrf.mxu2 }
  0xa7   :  { %v379_v61 = vadd.f32 %v360_v60, %v131_v58 }
  0xa9   :  { %v1218_v62 = vmul.f32 -1.442695, %v379_v61  ;;  %v374_v10 = vpop.f32.mrf.mxu3 }
  0xaa   :  { %v380_v16 = vadd.f32 %v374_v10, %v180_v12  ;;  %v184_v10 = vpop.f32.mrf.mxu1  ;;  %v1268_v12 = vld [vmem:[%s1889_s0 + $0x10] sm:$0xff] }
  0xab   :  { %1300 = vpow2.f32 %v1218_v62  ;;  %1140 = vmatmul.msk.bf16.gmra.mxu0 %vm91_vm1, %v1268_v12  ;;  %1148 = vmatmul.msk.bf16.gmra.mxu1 %vm91_vm1, %v1268_v12 }
  0xae   :  { %v362_v2 = vpop.f32.mrf.mxu2 }
  0xaf   :  { %v381_v4 = vadd.f32 %v362_v2, %v133_v0  ;;  %v136_v0 = vadd.f32 %v135_v63, %v1651_v56 }
  0xb1   :  { %v1301_v5 = vpop.eup %1300  ;;  %v1219_v6 = vmul.f32 -1.442695, %v381_v4  ;;  %v376_v24 = vpop.f32.mrf.mxu3 }
  0xb2   :  { %v389_v11 = vadd.f32 1.0, %v1301_v5  ;;  %v382_v27 = vadd.f32 %v376_v24, %v182_v21  ;;  %v137_v5 = vpop.f32.mrf.mxu0  ;;  %v186_v21 = vpop.f32.mrf.mxu1 }
  0xb3   :  { %1302 = vpow2.f32 %v1219_v6  ;;  %v138_v6 = vadd.f32 %v137_v5, %v1651_v56 }
  0xb4   :  { %1304 = vrcp.f32 %v389_v11  ;;  %v402_v32 = vand.u32 2147483648, %v389_v11  ;;  %vm396_vm3 = vweird.f32 %v389_v11  ;;  %v400_v35 = vand.u32 2147483647, %v389_v11 }
  0xb6   :  { %v403_v41 = vor.u32 1.1754944e-38, %v402_v32  ;;  %vm401_vm5 = vcmp.eq.f32.partialorder %v400_v35, 8.507059e+37 }
  0xb9   :  { %v1303_v15 = vpop.eup %1302 }
  0xba   :  { %v1305_v18 = vpop.eup %1304  ;;  %v390_v19 = vadd.f32 1.0, %v1303_v15 }
  0xbb   :  { %v392_v22 = vmul.f32 %v1305_v18, %v389_v11  ;;  %vm397_vm2 = vweird.f32 %v1305_v18 }
  0xbc   :  { %1306 = vrcp.f32 %v390_v19  ;;  %vm398_vm4 = vmor %vm396_vm3, %vm397_vm2  ;;  %v417_v42 = vand.u32 2147483648, %v390_v19  ;;  %v415_v45 = vand.u32 2147483647, %v390_v19  ;;  %vm411_vm7 = vweird.f32 %v390_v19 }
  0xbd   :  { %v393_v25 = vsub.f32 1.0, %v392_v22  ;;  %1308 = vtanh.f32 %v380_v16  ;;  %v185_v22 = vadd.f32 %v184_v10, %v1660_v9 }
  0xbe   :  { %1310 = vtanh.f32 %v382_v27  ;;  %v418_v51 = vor.u32 1.1754944e-38, %v417_v42  ;;  %vm416_vm9 = vcmp.eq.f32.partialorder %v415_v45, 8.507059e+37  ;;  %v187_v27 = vadd.f32 %v186_v21, %v1660_v9  ;;  %v1269_v21 = vld [vmem:[%s1889_s0 + $0x18] sm:$0xff] }
  0xbf   :  { %v394_v28 = vmul.f32 %v1305_v18, %v393_v25  ;;  %1141 = vmatmul.msk.bf16.gmra.mxu0 %vm91_vm1, %v1269_v21  ;;  %1149 = vmatmul.msk.bf16.gmra.mxu1 %vm91_vm1, %v1269_v21 }
  0xc1   :  { %v395_v29 = vadd.f32 %v1305_v18, %v394_v28 }
  0xc2   :  { %v1307_v30 = vpop.eup %1306 }
  0xc3   :  { %v1309_v33 = vpop.eup %1308  ;;  %v407_v34 = vmul.f32 %v1307_v30, %v390_v19  ;;  %v399_v38 = vsel %vm398_vm4, %v1305_v18, %v395_v29  ;;  %vm412_vm6 = vweird.f32 %v1307_v30 }
  0xc4   :  { %v423_v39 = vsub.f32 0.0, %v1309_v33  ;;  %v1311_v47 = vpop.eup %1310  ;;  %v404_v48 = vsel %vm401_vm5, %v403_v41, %v399_v38  ;;  %vm413_vm8 = vmor %vm411_vm7, %vm412_vm6 }
  0xc5   :  { %v408_v36 = vsub.f32 1.0, %v407_v34  ;;  %v424_v54 = vsub.f32 0.0, %v1311_v47 }
  0xc6   :  { %v425_v57 = vmul.f32 %v423_v39, %v404_v48 }
  0xc7   :  { %v409_v44 = vmul.f32 %v1307_v30, %v408_v36 }
  0xc8   :  { %v1664_v60 = vadd.f32 %v1309_v33, %v425_v57 }
  0xc9   :  { %v410_v50 = vadd.f32 %v1307_v30, %v409_v44 }
  0xcb   :  { %v414_v55 = vsel %vm413_vm8, %v1307_v30, %v410_v50 }
  0xcc   :  { %v419_v58 = vsel %vm416_vm9, %v418_v51, %v414_v55 }
  0xcd   :  { %v426_v59 = vmul.f32 %v424_v54, %v419_v58 }
  0xcf   :  { %v1666_v61 = vadd.f32 %v1311_v47, %v426_v59 }
  0xd1   :  { %v434_v62 = vpack.c.bf16 %v1666_v61, %v1664_v60 }
  0xd3   :  { %443 = vmatmul.bf16.vlgmr.msrb.gmra.mxu2 %v434_v62  ;;  %457 = vmatmul.bf16.vlgmr.msrb.gmra.mxu3 %v434_v62 }
  0xd4   :  { %603 = vmatpush.bf16.msrb.mxu2 %v1441_v3  ;;  %617 = vmatpush.bf16.msrb.mxu3 %v1455_v8 }
  0xd8   :  { %604 = vmatpush.bf16.msrb.mxu2 %v1453_v7  ;;  %618 = vmatpush.bf16.msrb.mxu3 %v1470_v13 }
  0xdc   :  { %605 = vmatpush.bf16.msrb.mxu2 %v1482_v17  ;;  %619 = vmatpush.bf16.msrb.mxu3 %v1491_v20 }
  0xe0   :  { %606 = vmatpush.bf16.msrb.mxu2 %v1500_v23  ;;  %620 = vmatpush.bf16.msrb.mxu3 %v1509_v26 }
  0xe4   :  { %607 = vmatpush.bf16.msrb.mxu2 %v1518_v31  ;;  %621 = vmatpush.bf16.msrb.mxu3 %v1530_v37 }
  0xe8   :  { %608 = vmatpush.bf16.msrb.mxu2 %v1541_v40  ;;  %622 = vmatpush.bf16.msrb.mxu3 %v1552_v43 }
  0xec   :  { %609 = vmatpush.bf16.msrb.mxu2 %v1563_v46  ;;  %623 = vmatpush.bf16.msrb.mxu3 %v1572_v49 }
  0xf0   :  { %610 = vmatpush.bf16.msrb.mxu2 %v1583_v52  ;;  %624 = vmatpush.bf16.msrb.mxu3 %v1586_v53 }
 0x156   :  { %v444_v1 = vpop.f32.mrf.mxu2  ;;  %v458_v16 = vpop.f32.mrf.mxu3 }
 0x157   :  { %v463_v2 = vadd.f32 %v444_v1, %v136_v0  ;;  %v464_v32 = vadd.f32 %v458_v16, %v185_v22 }
 0x159   :  { %v1220_v4 = vmul.f32 -1.442695, %v463_v2 }
 0x15b   :  { %1312 = vpow2.f32 %v1220_v4 }
 0x15e   :  { %v446_v11 = vpop.f32.mrf.mxu2  ;;  %v460_v30 = vpop.f32.mrf.mxu3 }
 0x15f   :  { %v465_v14 = vadd.f32 %v446_v11, %v138_v6  ;;  %v466_v34 = vadd.f32 %v460_v30, %v187_v27 }
 0x161   :  { %v1313_v15 = vpop.eup %1312  ;;  %v1221_v18 = vmul.f32 -1.442695, %v465_v14 }
 0x162   :  { %v473_v19 = vadd.f32 1.0, %v1313_v15 }
 0x163   :  { %1314 = vpow2.f32 %v1221_v18  ;;  %v189_v18 = vpop.f32.mrf.mxu1 }
 0x164   :  { %1316 = vrcp.f32 %v473_v19  ;;  %v486_v39 = vand.u32 2147483648, %v473_v19  ;;  %vm480_vm11 = vweird.f32 %v473_v19  ;;  %v484_v41 = vand.u32 2147483647, %v473_v19 }
 0x165   :  { %v190_v30 = vadd.f32 %v189_v18, %v1660_v9 }
 0x166   :  { %v487_v48 = vor.u32 1.1754944e-38, %v486_v39  ;;  %vm485_vm13 = vcmp.eq.f32.partialorder %v484_v41, 8.507059e+37  ;;  %v1270_v41 = vld [vmem:[%s1889_s0 + $0x20] sm:$0xff] }
 0x167   :  { %1142 = vmatmul.msk.bf16.gmra.mxu0 %vm91_vm1, %v1270_v41  ;;  %1150 = vmatmul.msk.bf16.gmra.mxu1 %vm91_vm1, %v1270_v41 }
 0x169   :  { %v1315_v24 = vpop.eup %1314 }
 0x16a   :  { %v1317_v25 = vpop.eup %1316  ;;  %v474_v28 = vadd.f32 1.0, %v1315_v24 }
 0x16b   :  { %v476_v29 = vmul.f32 %v1317_v25, %v473_v19  ;;  %vm481_vm10 = vweird.f32 %v1317_v25 }
 0x16c   :  { %1318 = vrcp.f32 %v474_v28  ;;  %vm482_vm12 = vmor %vm480_vm11, %vm481_vm10  ;;  %v501_v50 = vand.u32 2147483648, %v474_v28  ;;  %v499_v54 = vand.u32 2147483647, %v474_v28  ;;  %vm495_vm15 = vweird.f32 %v474_v28 }
 0x16d   :  { %v477_v33 = vsub.f32 1.0, %v476_v29  ;;  %1320 = vtanh.f32 %v464_v32  ;;  %v191_v29 = vpop.f32.mrf.mxu1 }
 0x16e   :  { %1322 = vtanh.f32 %v466_v34  ;;  %v502_v62 = vor.u32 1.1754944e-38, %v501_v50  ;;  %vm500_vm2 = vcmp.eq.f32.partialorder %v499_v54, 8.507059e+37  ;;  %v192_v34 = vadd.f32 %v191_v29, %v1660_v9 }
 0x16f   :  { %v478_v35 = vmul.f32 %v1317_v25, %v477_v33 }
 0x171   :  { %v479_v36 = vadd.f32 %v1317_v25, %v478_v35 }
 0x172   :  { %v1319_v38 = vpop.eup %1318 }
 0x173   :  { %v491_v42 = vmul.f32 %v1319_v38, %v474_v28  ;;  %v483_v44 = vsel %vm482_vm12, %v1317_v25, %v479_v36  ;;  %v1321_v47 = vpop.eup %1320  ;;  %vm496_vm14 = vweird.f32 %v1319_v38 }
 0x174   :  { %v1323_v55 = vpop.eup %1322  ;;  %v488_v57 = vsel %vm485_vm13, %v487_v48, %v483_v44  ;;  %v507_v58 = vsub.f32 %v1664_v60, %v1321_v47  ;;  %vm497_vm0 = vmor %vm495_vm15, %vm496_vm14  ;;  %v140_v60 = vpop.f32.mrf.mxu0 }
 0x175   :  { %v492_v45 = vsub.f32 1.0, %v491_v42  ;;  %v508_v1 = vsub.f32 %v1666_v61, %v1323_v55  ;;  %v141_v61 = vadd.f32 %v140_v60, %v1651_v56 }
 0x176   :  { %v509_v63 = vmul.f32 %v507_v58, %v488_v57 }
 0x177   :  { %v493_v51 = vmul.f32 %v1319_v38, %v492_v45 }
 0x178   :  { %v1697_v5 = vadd.f32 %v1321_v47, %v509_v63 }
 0x179   :  { %v494_v59 = vadd.f32 %v1319_v38, %v493_v51 }
 0x17b   :  { %v498_v0 = vsel %vm497_vm0, %v1319_v38, %v494_v59 }
 0x17c   :  { %v503_v2 = vsel %vm500_vm2, %v502_v62, %v498_v0  ;;  %v142_v15 = vpop.f32.mrf.mxu0 }
 0x17d   :  { %v510_v4 = vmul.f32 %v508_v1, %v503_v2  ;;  %v143_v16 = vadd.f32 %v142_v15, %v1651_v56  ;;  %v1271_v15 = vld [vmem:[%s1889_s0 + $0x28] sm:$0xff] }
 0x17e   :  { %1143 = vmatmul.msk.bf16.gmra.mxu0 %vm91_vm1, %v1271_v15  ;;  %1151 = vmatmul.msk.bf16.gmra.mxu1 %vm91_vm1, %v1271_v15 }
 0x17f   :  { %v1699_v6 = vadd.f32 %v1323_v55, %v510_v4 }
 0x181   :  { %v518_v10 = vpack.c.bf16 %v1699_v6, %v1697_v5 }
 0x183   :  { %527 = vmatmul.bf16.vlgmr.msra.gmra.mxu2 %v518_v10  ;;  %541 = vmatmul.bf16.vlgmr.msra.gmra.mxu3 %v518_v10 }
 0x184   :  { %771 = vmatpush.bf16.msra.mxu2 %v1441_v3  ;;  %785 = vmatpush.bf16.msra.mxu3 %v1455_v8 }
 0x188   :  { %772 = vmatpush.bf16.msra.mxu2 %v1453_v7  ;;  %786 = vmatpush.bf16.msra.mxu3 %v1470_v13 }
 0x18c   :  { %773 = vmatpush.bf16.msra.mxu2 %v1482_v17  ;;  %787 = vmatpush.bf16.msra.mxu3 %v1491_v20 }
 0x190   :  { %774 = vmatpush.bf16.msra.mxu2 %v1500_v23  ;;  %788 = vmatpush.bf16.msra.mxu3 %v1509_v26 }
 0x194   :  { %775 = vmatpush.bf16.msra.mxu2 %v1518_v31  ;;  %789 = vmatpush.bf16.msra.mxu3 %v1530_v37 }
 0x198   :  { %776 = vmatpush.bf16.msra.mxu2 %v1541_v40  ;;  %790 = vmatpush.bf16.msra.mxu3 %v1552_v43 }
 0x19c   :  { %777 = vmatpush.bf16.msra.mxu2 %v1563_v46  ;;  %791 = vmatpush.bf16.msra.mxu3 %v1572_v49 }
 0x1a0   :  { %778 = vmatpush.bf16.msra.mxu2 %v1583_v52  ;;  %792 = vmatpush.bf16.msra.mxu3 %v1586_v53 }
 0x206   :  { %v528_v11 = vpop.f32.mrf.mxu2  ;;  %v542_v25 = vpop.f32.mrf.mxu3 }
 0x207   :  { %v547_v12 = vadd.f32 %v528_v11, %v141_v61  ;;  %v548_v39 = vadd.f32 %v542_v25, %v190_v30 }
 0x209   :  { %v1222_v14 = vmul.f32 -1.442695, %v547_v12 }
 0x20b   :  { %1324 = vpow2.f32 %v1222_v14 }
 0x20e   :  { %v530_v19 = vpop.f32.mrf.mxu2  ;;  %v544_v38 = vpop.f32.mrf.mxu3 }
 0x20f   :  { %v549_v22 = vadd.f32 %v530_v19, %v143_v16  ;;  %v550_v44 = vadd.f32 %v544_v38, %v192_v34 }
 0x211   :  { %v1325_v24 = vpop.eup %1324  ;;  %v1223_v27 = vmul.f32 -1.442695, %v549_v22 }
 0x212   :  { %v557_v28 = vadd.f32 1.0, %v1325_v24 }
 0x213   :  { %1326 = vpow2.f32 %v1223_v27 }
 0x214   :  { %1328 = vrcp.f32 %v557_v28  ;;  %v570_v50 = vand.u32 2147483648, %v557_v28  ;;  %vm564_vm4 = vweird.f32 %v557_v28  ;;  %v568_v51 = vand.u32 2147483647, %v557_v28 }
 0x216   :  { %v571_v59 = vor.u32 1.1754944e-38, %v570_v50  ;;  %vm569_vm6 = vcmp.eq.f32.partialorder %v568_v51, 8.507059e+37 }
 0x219   :  { %v1327_v32 = vpop.eup %1326 }
 0x21a   :  { %v1329_v33 = vpop.eup %1328  ;;  %v558_v35 = vadd.f32 1.0, %v1327_v32 }
 0x21b   :  { %v560_v36 = vmul.f32 %v1329_v33, %v557_v28  ;;  %vm565_vm3 = vweird.f32 %v1329_v33 }
 0x21c   :  { %1330 = vrcp.f32 %v558_v35  ;;  %vm566_vm5 = vmor %vm564_vm4, %vm565_vm3  ;;  %v585_v62 = vand.u32 2147483648, %v558_v35  ;;  %v583_v0 = vand.u32 2147483647, %v558_v35  ;;  %vm579_vm8 = vweird.f32 %v558_v35 }
 0x21d   :  { %v561_v42 = vsub.f32 1.0, %v560_v36  ;;  %1332 = vtanh.f32 %v548_v39 }
 0x21e   :  { %1334 = vtanh.f32 %v550_v44  ;;  %v586_v60 = vor.u32 1.1754944e-38, %v585_v62  ;;  %vm584_vm10 = vcmp.eq.f32.partialorder %v583_v0, 8.507059e+37 }
 0x21f   :  { %v562_v45 = vmul.f32 %v1329_v33, %v561_v42 }
 0x221   :  { %v563_v47 = vadd.f32 %v1329_v33, %v562_v45 }
 0x222   :  { %v1331_v48 = vpop.eup %1330 }
 0x223   :  { %v575_v54 = vmul.f32 %v1331_v48, %v558_v35  ;;  %v567_v55 = vsel %vm566_vm5, %v1329_v33, %v563_v47  ;;  %v1333_v58 = vpop.eup %1332  ;;  %vm580_vm7 = vweird.f32 %v1331_v48 }
 0x224   :  { %v1335_v1 = vpop.eup %1334  ;;  %v572_v2 = vsel %vm569_vm6, %v571_v59, %v567_v55  ;;  %v591_v4 = vsub.f32 %v1697_v5, %v1333_v58  ;;  %vm581_vm9 = vmor %vm579_vm8, %vm580_vm7 }
 0x225   :  { %v576_v57 = vsub.f32 1.0, %v575_v54  ;;  %v592_v12 = vsub.f32 %v1699_v6, %v1335_v1 }
 0x226   :  { %v593_v61 = vmul.f32 %v591_v4, %v572_v2 }
 0x227   :  { %v577_v63 = vmul.f32 %v1331_v48, %v576_v57 }
 0x228   :  { %v1738_v18 = vadd.f32 %v1333_v58, %v593_v61 }
 0x229   :  { %v578_v10 = vadd.f32 %v1331_v48, %v577_v63 }
 0x22b   :  { %v582_v11 = vsel %vm581_vm9, %v1331_v48, %v578_v10 }
 0x22c   :  { %v587_v14 = vsel %vm584_vm10, %v586_v60, %v582_v11 }
 0x22d   :  { %v594_v16 = vmul.f32 %v592_v12, %v587_v14 }
 0x22f   :  { %v1740_v19 = vadd.f32 %v1335_v1, %v594_v16 }
 0x231   :  { %v602_v5 = vpack.c.bf16 %v1740_v19, %v1738_v18 }
 0x233   :  { %611 = vmatmul.bf16.vlgmr.msrb.gmra.mxu2 %v602_v5  ;;  %625 = vmatmul.bf16.vlgmr.msrb.gmra.mxu3 %v602_v5 }
 0x234   :  { %939 = vmatpush.bf16.msrb.mxu2 %v1441_v3  ;;  %953 = vmatpush.bf16.msrb.mxu3 %v1455_v8  ;;  %v1272_v3 = vld [vmem:[%s1889_s0 + $0x30] sm:$0xff]  ;;  %v145_v8 = vpop.f32.mrf.mxu0 }
 0x235   :  { %1144 = vmatmul.msk.bf16.gmra.mxu0 %vm91_vm1, %v1272_v3  ;;  %1152 = vmatmul.msk.bf16.gmra.mxu1 %vm91_vm1, %v1272_v3 }
 0x238   :  { %940 = vmatpush.bf16.msrb.mxu2 %v1453_v7  ;;  %954 = vmatpush.bf16.msrb.mxu3 %v1470_v13  ;;  %v1273_v7 = vld [vmem:[%s1889_s0 + $0x38] sm:$0xff]  ;;  %v146_v13 = vadd.f32 %v145_v8, %v1651_v56 }
 0x23c   :  { %941 = vmatpush.bf16.msrb.mxu2 %v1482_v17  ;;  %955 = vmatpush.bf16.msrb.mxu3 %v1491_v20 }
 0x240   :  { %942 = vmatpush.bf16.msrb.mxu2 %v1500_v23  ;;  %956 = vmatpush.bf16.msrb.mxu3 %v1509_v26  ;;  %v147_v26 = vpop.f32.mrf.mxu0 }
 0x244   :  { %943 = vmatpush.bf16.msrb.mxu2 %v1518_v31  ;;  %957 = vmatpush.bf16.msrb.mxu3 %v1530_v37  ;;  %v148_v31 = vadd.f32 %v147_v26, %v1651_v56  ;;  %v194_v37 = vpop.f32.mrf.mxu1 }
 0x245   :  { %1145 = vmatmul.msk.bf16.gmra.mxu0 %vm91_vm1, %v1273_v7  ;;  %1153 = vmatmul.msk.bf16.gmra.mxu1 %vm91_vm1, %v1273_v7  ;;  %v195_v21 = vadd.f32 %v194_v37, %v1660_v9 }
 0x248   :  { %944 = vmatpush.bf16.msrb.mxu2 %v1541_v40  ;;  %958 = vmatpush.bf16.msrb.mxu3 %v1552_v43  ;;  %v150_v61 = vpop.f32.mrf.mxu0 }
 0x24c   :  { %945 = vmatpush.bf16.msrb.mxu2 %v1563_v46  ;;  %959 = vmatpush.bf16.msrb.mxu3 %v1572_v49  ;;  %v196_v6 = vpop.f32.mrf.mxu1 }
 0x24d   :  { %v197_v25 = vadd.f32 %v196_v6, %v1660_v9 }
 0x250   :  { %946 = vmatpush.bf16.msrb.mxu2 %v1583_v52  ;;  %960 = vmatpush.bf16.msrb.mxu3 %v1586_v53  ;;  %v152_v12 = vpop.f32.mrf.mxu0 }
 0x254   :  { %v199_v11 = vpop.f32.mrf.mxu1 }
 0x258   :  { %v1784_v15 = vpop.f32.mrf.mxu0 }
 0x25c   :  { %v201_v14 = vpop.f32.mrf.mxu1 }
 0x264   :  { %v1786_v16 = vpop.f32.mrf.mxu1 }
 0x2b6   :  { %v612_v17 = vpop.f32.mrf.mxu2  ;;  %v626_v49 = vpop.f32.mrf.mxu3 }
 0x2b7   :  { %v631_v20 = vadd.f32 %v612_v17, %v146_v13  ;;  %v632_v30 = vadd.f32 %v626_v49, %v195_v21 }
 0x2b9   :  { %v1224_v23 = vmul.f32 -1.442695, %v631_v20 }
 0x2bb   :  { %1336 = vpow2.f32 %v1224_v23  ;;  %v151_v23 = vadd.f32 %v150_v61, %v1651_v56 }
 0x2be   :  { %v614_v40 = vpop.f32.mrf.mxu2  ;;  %v628_v29 = vpop.f32.mrf.mxu3 }
 0x2bf   :  { %v633_v43 = vadd.f32 %v614_v40, %v148_v31  ;;  %v634_v33 = vadd.f32 %v628_v29, %v197_v25 }
 0x2c1   :  { %v1337_v46 = vpop.eup %1336  ;;  %v1225_v52 = vmul.f32 -1.442695, %v633_v43  ;;  %v153_v43 = vadd.f32 %v152_v12, %v1651_v56  ;;  %v156_v12 = vadd.f32 %v1784_v15, %v1651_v56 }
 0x2c2   :  { %v641_v53 = vadd.f32 1.0, %v1337_v46 }
 0x2c3   :  { %1338 = vpow2.f32 %v1225_v52 }
 0x2c4   :  { %1340 = vrcp.f32 %v641_v53  ;;  %v654_v38 = vand.u32 2147483648, %v641_v53  ;;  %vm648_vm11 = vweird.f32 %v641_v53  ;;  %v652_v41 = vand.u32 2147483647, %v641_v53 }
 0x2c6   :  { %v655_v47 = vor.u32 1.1754944e-38, %v654_v38  ;;  %vm653_vm13 = vcmp.eq.f32.partialorder %v652_v41, 8.507059e+37 }
 0x2c9   :  { %v1339_v22 = vpop.eup %1338 }
 0x2ca   :  { %v1341_v24 = vpop.eup %1340  ;;  %v642_v27 = vadd.f32 1.0, %v1339_v22  ;;  %v200_v22 = vadd.f32 %v199_v11, %v1660_v9 }
 0x2cb   :  { %v644_v28 = vmul.f32 %v1341_v24, %v641_v53  ;;  %vm649_vm1 = vweird.f32 %v1341_v24 }
 0x2cc   :  { %1342 = vrcp.f32 %v642_v27  ;;  %vm650_vm12 = vmor %vm648_vm11, %vm649_vm1  ;;  %v669_v48 = vand.u32 2147483648, %v642_v27  ;;  %v667_v51 = vand.u32 2147483647, %v642_v27  ;;  %vm663_vm15 = vweird.f32 %v642_v27 }
 0x2cd   :  { %v645_v32 = vsub.f32 1.0, %v644_v28  ;;  %1344 = vtanh.f32 %v632_v30 }
 0x2ce   :  { %1346 = vtanh.f32 %v634_v33  ;;  %v670_v59 = vor.u32 1.1754944e-38, %v669_v48  ;;  %vm668_vm2 = vcmp.eq.f32.partialorder %v667_v51, 8.507059e+37 }
 0x2cf   :  { %v646_v34 = vmul.f32 %v1341_v24, %v645_v32  ;;  %v202_v32 = vadd.f32 %v201_v14, %v1660_v9 }
 0x2d1   :  { %v647_v35 = vadd.f32 %v1341_v24, %v646_v34 }
 0x2d2   :  { %v1343_v36 = vpop.eup %1342 }
 0x2d3   :  { %v659_v39 = vmul.f32 %v1343_v36, %v642_v27  ;;  %v651_v44 = vsel %vm650_vm12, %v1341_v24, %v647_v35  ;;  %v1345_v45 = vpop.eup %1344  ;;  %vm664_vm14 = vweird.f32 %v1343_v36 }
 0x2d4   :  { %v1347_v54 = vpop.eup %1346  ;;  %v656_v55 = vsel %vm653_vm13, %v655_v47, %v651_v44  ;;  %v675_v57 = vsub.f32 %v1738_v18, %v1345_v45  ;;  %vm665_vm0 = vmor %vm663_vm15, %vm664_vm14  ;;  %v1788_v18 = vpop.f32.mrf.mxu0 }
 0x2d5   :  { %v660_v42 = vsub.f32 1.0, %v659_v39  ;;  %v676_v62 = vsub.f32 %v1740_v19, %v1347_v54  ;;  %v1790_v19 = vpop.f32.mrf.mxu1 }
 0x2d6   :  { %v677_v0 = vmul.f32 %v675_v57, %v656_v55 }
 0x2d7   :  { %v661_v50 = vmul.f32 %v1343_v36, %v660_v42 }
 0x2d8   :  { %v1778_v4 = vadd.f32 %v1345_v45, %v677_v0 }
 0x2d9   :  { %v662_v58 = vadd.f32 %v1343_v36, %v661_v50 }
 0x2db   :  { %v666_v63 = vsel %vm665_vm0, %v1343_v36, %v662_v58 }
 0x2dc   :  { %v671_v1 = vsel %vm668_vm2, %v670_v59, %v666_v63  ;;  %v1792_v5 = vpop.f32.mrf.mxu0 }
 0x2dd   :  { %v678_v2 = vmul.f32 %v676_v62, %v671_v1  ;;  %v1794_v3 = vpop.f32.mrf.mxu1 }
 0x2df   :  { %v1780_v10 = vadd.f32 %v1347_v54, %v678_v2 }
 0x2e1   :  { %v686_v60 = vpack.c.bf16 %v1780_v10, %v1778_v4 }
 0x2e3   :  { %695 = vmatmul.bf16.vlgmr.msrb.gmra.mxu0 %v686_v60  ;;  %709 = vmatmul.bf16.vlgmr.msrb.gmra.mxu1 %v686_v60 }
 0x2e4   :  { %v1796_v7 = vpop.f32.mrf.mxu0 }
 0x2e5   :  { %v1798_v8 = vpop.f32.mrf.mxu1 }
 0x2ec   :  { %v1800_v13 = vpop.f32.mrf.mxu0 }
 0x2ed   :  { %v1802_v17 = vpop.f32.mrf.mxu1 }
 0x2f4   :  { %v1804_v20 = vpop.f32.mrf.mxu0 }
 0x2f5   :  { %v1807_v31 = vpop.f32.mrf.mxu1 }
 0x360   :  { %v696_v26 = vpop.f32.mrf.mxu0  ;;  %v710_v53 = vpop.f32.mrf.mxu1 }
 0x361   :  { %v715_v37 = vadd.f32 %v696_v26, %v151_v23  ;;  %v716_v24 = vadd.f32 %v710_v53, %v200_v22  ;;  %v205_v53 = vadd.f32 %v1786_v16, %v1660_v9 }
 0x363   :  { %v1226_v40 = vmul.f32 -1.442695, %v715_v37  ;;  %v158_v37 = vadd.f32 %v1788_v18, %v1651_v56  ;;  %v207_v18 = vadd.f32 %v1790_v19, %v1660_v9 }
 0x365   :  { %1348 = vpow2.f32 %v1226_v40 }
 0x368   :  { %v698_v46 = vpop.f32.mrf.mxu0  ;;  %v712_v30 = vpop.f32.mrf.mxu1 }
 0x369   :  { %v717_v49 = vadd.f32 %v698_v46, %v153_v43  ;;  %v718_v35 = vadd.f32 %v712_v30, %v202_v32 }
 0x36b   :  { %v1349_v52 = vpop.eup %1348  ;;  %v1227_v6 = vmul.f32 -1.442695, %v717_v49 }
 0x36c   :  { %v725_v21 = vadd.f32 1.0, %v1349_v52 }
 0x36d   :  { %1350 = vpow2.f32 %v1227_v6 }
 0x36e   :  { %1352 = vrcp.f32 %v725_v21  ;;  %v738_v34 = vand.u32 2147483648, %v725_v21  ;;  %v736_v38 = vand.u32 2147483647, %v725_v21  ;;  %vm732_vm4 = vweird.f32 %v725_v21 }
 0x36f   :  { %1354 = vtanh.f32 %v716_v24 }
 0x370   :  { %v739_v44 = vor.u32 1.1754944e-38, %v738_v34  ;;  %vm737_vm6 = vcmp.eq.f32.partialorder %v736_v38, 8.507059e+37 }
 0x373   :  { %v1351_v25 = vpop.eup %1350 }
 0x374   :  { %v1353_v27 = vpop.eup %1352  ;;  %v726_v28 = vadd.f32 1.0, %v1351_v25 }
 0x375   :  { %v728_v29 = vmul.f32 %v1353_v27, %v725_v21  ;;  %vm733_vm3 = vweird.f32 %v1353_v27  ;;  %v1355_v39 = vpop.eup %1354 }
 0x376   :  { %1356 = vrcp.f32 %v726_v28  ;;  %vm734_vm5 = vmor %vm732_vm4, %vm733_vm3  ;;  %v759_v47 = vsub.f32 %v1778_v4, %v1355_v39  ;;  %v753_v55 = vand.u32 2147483648, %v726_v28  ;;  %v751_v59 = vand.u32 2147483647, %v726_v28 }
 0x377   :  { %v729_v33 = vsub.f32 1.0, %v728_v29  ;;  %1358 = vtanh.f32 %v718_v35  ;;  %vm747_vm8 = vweird.f32 %v726_v28 }
 0x378   :  { %v754_v0 = vor.u32 1.1754944e-38, %v753_v55  ;;  %vm752_vm10 = vcmp.eq.f32.partialorder %v751_v59, 8.507059e+37 }
 0x379   :  { %v730_v36 = vmul.f32 %v1353_v27, %v729_v33 }
 0x37b   :  { %v731_v41 = vadd.f32 %v1353_v27, %v730_v36 }
 0x37c   :  { %v1357_v42 = vpop.eup %1356 }
 0x37d   :  { %v735_v45 = vsel %vm734_vm5, %v1353_v27, %v731_v41  ;;  %v743_v48 = vmul.f32 %v1357_v42, %v726_v28  ;;  %vm748_vm7 = vweird.f32 %v1357_v42  ;;  %v1359_v62 = vpop.eup %1358 }
 0x37e   :  { %v740_v50 = vsel %vm737_vm6, %v739_v44, %v735_v45  ;;  %vm749_vm9 = vmor %vm747_vm8, %vm748_vm7  ;;  %v760_v2 = vsub.f32 %v1780_v10, %v1359_v62 }
 0x37f   :  { %v761_v51 = vmul.f32 %v759_v47, %v740_v50  ;;  %v744_v54 = vsub.f32 1.0, %v743_v48 }
 0x381   :  { %v763_v57 = vadd.f32 %v1355_v39, %v761_v51  ;;  %v745_v58 = vmul.f32 %v1357_v42, %v744_v54 }
 0x383   :  { %v746_v63 = vadd.f32 %v1357_v42, %v745_v58 }
 0x385   :  { %v750_v1 = vsel %vm749_vm9, %v1357_v42, %v746_v63 }
 0x386   :  { %v755_v60 = vsel %vm752_vm10, %v754_v0, %v750_v1  ;;  %v161_v0 = vadd.f32 %v1792_v5, %v1651_v56 }
 0x387   :  { %v762_v4 = vmul.f32 %v760_v2, %v755_v60 }
 0x389   :  { %v1814_v61 = vadd.f32 %v1359_v62, %v762_v4  ;;  %v163_v4 = vadd.f32 %v1796_v7, %v1651_v56  ;;  %v212_v7 = vadd.f32 %v1798_v8, %v1660_v9 }
 0x38b   :  { %v770_v11 = vpack.c.bf16 %v1814_v61, %v763_v57 }
 0x38d   :  { %779 = vmatmul.bf16.vlgmr.msra.gmra.mxu2 %v770_v11  ;;  %793 = vmatmul.bf16.vlgmr.msra.gmra.mxu3 %v770_v11 }
 0x410   :  { %v780_v14 = vpop.f32.mrf.mxu2  ;;  %v794_v46 = vpop.f32.mrf.mxu3 }
 0x411   :  { %v799_v23 = vadd.f32 %v780_v14, %v156_v12  ;;  %v800_v6 = vadd.f32 %v794_v46, %v205_v53 }
 0x413   :  { %v1228_v26 = vmul.f32 -1.442695, %v799_v23 }
 0x415   :  { %1360 = vpow2.f32 %v1228_v26 }
 0x418   :  { %v782_v40 = vpop.f32.mrf.mxu2  ;;  %v796_v25 = vpop.f32.mrf.mxu3 }
 0x419   :  { %v801_v10 = vadd.f32 %v782_v40, %v158_v37  ;;  %v802_v29 = vadd.f32 %v796_v25, %v207_v18  ;;  %v210_v37 = vadd.f32 %v1794_v3, %v1660_v9 }
 0x41b   :  { %v1361_v43 = vpop.eup %1360  ;;  %v1229_v49 = vmul.f32 -1.442695, %v801_v10 }
 0x41c   :  { %v809_v52 = vadd.f32 1.0, %v1361_v43 }
 0x41d   :  { %1362 = vpow2.f32 %v1229_v49 }
 0x41e   :  { %1364 = vrcp.f32 %v809_v52  ;;  %v822_v28 = vand.u32 2147483648, %v809_v52  ;;  %v820_v32 = vand.u32 2147483647, %v809_v52  ;;  %vm816_vm11 = vweird.f32 %v809_v52 }
 0x41f   :  { %1366 = vtanh.f32 %v800_v6 }
 0x420   :  { %v823_v35 = vor.u32 1.1754944e-38, %v822_v28  ;;  %vm821_vm13 = vcmp.eq.f32.partialorder %v820_v32, 8.507059e+37 }
 0x423   :  { %v1363_v15 = vpop.eup %1362 }
 0x424   :  { %v1365_v21 = vpop.eup %1364  ;;  %v810_v22 = vadd.f32 1.0, %v1363_v15 }
 0x425   :  { %v812_v24 = vmul.f32 %v1365_v21, %v809_v52  ;;  %vm817_vm1 = vweird.f32 %v1365_v21  ;;  %v1367_v33 = vpop.eup %1366 }
 0x426   :  { %1368 = vrcp.f32 %v810_v22  ;;  %vm818_vm12 = vmor %vm816_vm11, %vm817_vm1  ;;  %v843_v38 = vsub.f32 %v763_v57, %v1367_v33  ;;  %v837_v44 = vand.u32 2147483648, %v810_v22  ;;  %v835_v48 = vand.u32 2147483647, %v810_v22 }
 0x427   :  { %v813_v27 = vsub.f32 1.0, %v812_v24  ;;  %1370 = vtanh.f32 %v802_v29  ;;  %vm831_vm15 = vweird.f32 %v810_v22 }
 0x428   :  { %v838_v54 = vor.u32 1.1754944e-38, %v837_v44  ;;  %vm836_vm2 = vcmp.eq.f32.partialorder %v835_v48, 8.507059e+37  ;;  %v1296_v48 = vld [vmem:[%s1892_s4 + $0x30] sm:$0xff] }
 0x429   :  { %v814_v30 = vmul.f32 %v1365_v21, %v813_v27 }
 0x42b   :  { %v815_v16 = vadd.f32 %v1365_v21, %v814_v30 }
 0x42c   :  { %v1369_v34 = vpop.eup %1368 }
 0x42d   :  { %v819_v36 = vsel %vm818_vm12, %v1365_v21, %v815_v16  ;;  %v827_v39 = vmul.f32 %v1369_v34, %v810_v22  ;;  %vm832_vm14 = vweird.f32 %v1369_v34  ;;  %v1371_v50 = vpop.eup %1370 }
 0x42e   :  { %v824_v41 = vsel %vm821_vm13, %v823_v35, %v819_v36  ;;  %vm833_vm0 = vmor %vm831_vm15, %vm832_vm14  ;;  %v844_v58 = vsub.f32 %v1814_v61, %v1371_v50 }
 0x42f   :  { %v845_v19 = vmul.f32 %v843_v38, %v824_v41  ;;  %v828_v42 = vsub.f32 1.0, %v827_v39 }
 0x431   :  { %v847_v45 = vadd.f32 %v1367_v33, %v845_v19  ;;  %v829_v47 = vmul.f32 %v1369_v34, %v828_v42 }
 0x433   :  { %v830_v51 = vadd.f32 %v1369_v34, %v829_v47  ;;  %v1297_v47 = vld [vmem:[%s1892_s4 + $0x38] sm:$0xff] }
 0x434   :  { %1086 = vmatpush.bf16.msrb.mxu0 %v1297_v47 }
 0x435   :  { %v834_v55 = vsel %vm833_vm0, %v1369_v34, %v830_v51  ;;  %v1294_v51 = vld [vmem:[%s1892_s4 + $0x20] sm:$0xff] }
 0x436   :  { %v839_v59 = vsel %vm836_vm2, %v838_v54, %v834_v55  ;;  %v1293_v54 = vld [vmem:[%s1892_s4 + $0x18] sm:$0xff]  ;;  %v166_v55 = vadd.f32 %v1800_v13, %v1651_v56 }
 0x437   :  { %v846_v57 = vmul.f32 %v844_v58, %v839_v59 }
 0x438   :  { %1087 = vmatpush.bf16.msrb.mxu0 %v1296_v48 }
 0x439   :  { %v1826_v62 = vadd.f32 %v1371_v50, %v846_v57  ;;  %v1295_v50 = vld [vmem:[%s1892_s4 + $0x28] sm:$0xff]  ;;  %v1292_v57 = vld [vmem:[%s1892_s4 + $0x10] sm:$0xff] }
 0x43b   :  { %v854_v63 = vpack.c.bf16 %v1826_v62, %v847_v45 }
 0x43c   :  { %1088 = vmatpush.bf16.msrb.mxu0 %v1295_v50 }
 0x43d   :  { %863 = vmatmul.bf16.vlgmr.msra.gmra.mxu0 %v854_v63  ;;  %877 = vmatmul.bf16.vlgmr.msra.gmra.mxu1 %v854_v63  ;;  %v1291_v63 = vld [vmem:[%s1892_s4 + $0x8] sm:$0xff] }
 0x440   :  { %1089 = vmatpush.bf16.msrb.mxu0 %v1294_v51 }
 0x444   :  { %1090 = vmatpush.bf16.msrb.mxu0 %v1293_v54 }
 0x448   :  { %1091 = vmatpush.bf16.msrb.mxu0 %v1292_v57 }
 0x44c   :  { %1092 = vmatpush.bf16.msrb.mxu0 %v1291_v63 }
 0x4ba   :  { %v864_v1 = vpop.f32.mrf.mxu0  ;;  %v878_v14 = vpop.f32.mrf.mxu1 }
 0x4bb   :  { %v883_v2 = vadd.f32 %v864_v1, %v161_v0  ;;  %v884_v40 = vadd.f32 %v878_v14, %v210_v37  ;;  %v168_v0 = vadd.f32 %v1804_v20, %v1651_v56 }
 0x4bd   :  { %v1230_v60 = vmul.f32 -1.442695, %v883_v2  ;;  %v1290_v2 = vld [vmem:[%s1892_s4] sm:$0xff] }
 0x4be   :  { %1093 = vmatpush.bf16.msrb.mxu0 %v1290_v2 }
 0x4bf   :  { %1372 = vpow2.f32 %v1230_v60 }
 0x4c2   :  { %v866_v11 = vpop.f32.mrf.mxu0  ;;  %v880_v49 = vpop.f32.mrf.mxu1 }
 0x4c3   :  { %v885_v61 = vadd.f32 %v866_v11, %v163_v4  ;;  %v886_v6 = vadd.f32 %v880_v49, %v212_v7 }
 0x4c5   :  { %v1373_v12 = vpop.eup %1372  ;;  %v1231_v23 = vmul.f32 -1.442695, %v885_v61 }
 0x4c6   :  { %v893_v26 = vadd.f32 1.0, %v1373_v12  ;;  %v215_v12 = vadd.f32 %v1802_v17, %v1660_v9 }
 0x4c7   :  { %1374 = vpow2.f32 %v1231_v23 }
 0x4c8   :  { %1376 = vrcp.f32 %v893_v26  ;;  %v906_v53 = vand.u32 2147483648, %v893_v26  ;;  %v904_v21 = vand.u32 2147483647, %v893_v26  ;;  %vm900_vm4 = vweird.f32 %v893_v26 }
 0x4c9   :  { %1378 = vtanh.f32 %v884_v40  ;;  %v217_v40 = vadd.f32 %v1807_v31, %v1660_v9 }
 0x4ca   :  { %v907_v25 = vor.u32 1.1754944e-38, %v906_v53  ;;  %vm905_vm6 = vcmp.eq.f32.partialorder %v904_v21, 8.507059e+37 }
 0x4cd   :  { %v1375_v5 = vpop.eup %1374 }
 0x4ce   :  { %v1377_v10 = vpop.eup %1376  ;;  %v894_v43 = vadd.f32 1.0, %v1375_v5 }
 0x4cf   :  { %v896_v46 = vmul.f32 %v1377_v10, %v893_v26  ;;  %vm901_vm3 = vweird.f32 %v1377_v10  ;;  %v1379_v22 = vpop.eup %1378 }
 0x4d0   :  { %1380 = vrcp.f32 %v894_v43  ;;  %vm902_vm5 = vmor %vm900_vm4, %vm901_vm3  ;;  %v927_v27 = vsub.f32 %v847_v45, %v1379_v22  ;;  %v921_v32 = vand.u32 2147483648, %v894_v43  ;;  %v919_v34 = vand.u32 2147483647, %v894_v43 }
 0x4d1   :  { %v897_v52 = vsub.f32 1.0, %v896_v46  ;;  %1382 = vtanh.f32 %v886_v6  ;;  %vm915_vm8 = vweird.f32 %v894_v43 }
 0x4d2   :  { %v922_v38 = vor.u32 1.1754944e-38, %v921_v32  ;;  %vm920_vm10 = vcmp.eq.f32.partialorder %v919_v34, 8.507059e+37 }
 0x4d3   :  { %v898_v15 = vmul.f32 %v1377_v10, %v897_v52 }
 0x4d5   :  { %v899_v3 = vadd.f32 %v1377_v10, %v898_v15 }
 0x4d6   :  { %v1381_v24 = vpop.eup %1380 }
 0x4d7   :  { %v903_v18 = vsel %vm902_vm5, %v1377_v10, %v899_v3  ;;  %v911_v28 = vmul.f32 %v1381_v24, %v894_v43  ;;  %vm916_vm7 = vweird.f32 %v1381_v24  ;;  %v1383_v35 = vpop.eup %1382 }
 0x4d8   :  { %v908_v29 = vsel %vm905_vm6, %v907_v25, %v903_v18  ;;  %vm917_vm9 = vmor %vm915_vm8, %vm916_vm7  ;;  %v928_v41 = vsub.f32 %v1826_v62, %v1383_v35 }
 0x4d9   :  { %v929_v8 = vmul.f32 %v927_v27, %v908_v29  ;;  %v912_v30 = vsub.f32 1.0, %v911_v28 }
 0x4db   :  { %v1837_v33 = vadd.f32 %v1379_v22, %v929_v8  ;;  %v913_v16 = vmul.f32 %v1381_v24, %v912_v30 }
 0x4dd   :  { %v914_v36 = vadd.f32 %v1381_v24, %v913_v16 }
 0x4df   :  { %v918_v39 = vsel %vm917_vm9, %v1381_v24, %v914_v36 }
 0x4e0   :  { %v923_v19 = vsel %vm920_vm10, %v922_v38, %v918_v39 }
 0x4e1   :  { %v930_v42 = vmul.f32 %v928_v41, %v923_v19 }
 0x4e3   :  { %v1840_v44 = vadd.f32 %v1383_v35, %v930_v42  ;;  %v1299_v35 = vld [vmem:[%s1891_s5] ss:$0 sm:$0xff] }
 0x4e5   :  { %v938_v45 = vpack.c.bf16 %v1840_v44, %v1837_v33 }
 0x4e7   :  { %947 = vmatmul.bf16.vlgmr.msrb.gmra.mxu2 %v938_v45  ;;  %961 = vmatmul.bf16.vlgmr.msrb.gmra.mxu3 %v938_v45 }
 0x56a   :  { %v948_v58 = vpop.f32.mrf.mxu2  ;;  %v962_v4 = vpop.f32.mrf.mxu3 }
 0x56b   :  { %v967_v59 = vadd.f32 %v948_v58, %v166_v55  ;;  %v968_v14 = vadd.f32 %v962_v4, %v215_v12 }
 0x56d   :  { %v1232_v62 = vmul.f32 -1.442695, %v967_v59 }
 0x56f   :  { %1384 = vpow2.f32 %v1232_v62 }
 0x572   :  { %v950_v1 = vpop.f32.mrf.mxu2  ;;  %v964_v37 = vpop.f32.mrf.mxu3 }
 0x573   :  { %v969_v13 = vadd.f32 %v950_v1, %v168_v0  ;;  %v970_v43 = vadd.f32 %v964_v37, %v217_v40 }
 0x575   :  { %v1385_v60 = vpop.eup %1384  ;;  %v1233_v11 = vmul.f32 -1.442695, %v969_v13 }
 0x576   :  { %v977_v61 = vadd.f32 1.0, %v1385_v60 }
 0x577   :  { %1386 = vpow2.f32 %v1233_v11 }
 0x578   :  { %1388 = vrcp.f32 %v977_v61  ;;  %v990_v10 = vand.u32 2147483648, %v977_v61  ;;  %v988_v49 = vand.u32 2147483647, %v977_v61  ;;  %vm984_vm11 = vweird.f32 %v977_v61 }
 0x579   :  { %1390 = vtanh.f32 %v968_v14 }
 0x57a   :  { %v991_v53 = vor.u32 1.1754944e-38, %v990_v10  ;;  %vm989_vm13 = vcmp.eq.f32.partialorder %v988_v49, 8.507059e+37 }
 0x57d   :  { %v1387_v23 = vpop.eup %1386 }
 0x57e   :  { %v1389_v56 = vpop.eup %1388  ;;  %v978_v20 = vadd.f32 1.0, %v1387_v23 }
 0x57f   :  { %v980_v26 = vmul.f32 %v1389_v56, %v977_v61  ;;  %vm985_vm1 = vweird.f32 %v1389_v56  ;;  %v1391_v7 = vpop.eup %1390 }
 0x580   :  { %1392 = vrcp.f32 %v978_v20  ;;  %vm986_vm12 = vmor %vm984_vm11, %vm985_vm1  ;;  %v1011_v15 = vsub.f32 %v1837_v33, %v1391_v7  ;;  %v1005_v3 = vand.u32 2147483648, %v978_v20  ;;  %v1003_v18 = vand.u32 2147483647, %v978_v20 }
 0x581   :  { %v981_v5 = vsub.f32 1.0, %v980_v26  ;;  %1394 = vtanh.f32 %v970_v43  ;;  %vm999_vm15 = vweird.f32 %v978_v20 }
 0x582   :  { %v1006_v29 = vor.u32 1.1754944e-38, %v1005_v3  ;;  %vm1004_vm2 = vcmp.eq.f32.partialorder %v1003_v18, 8.507059e+37 }
 0x583   :  { %v982_v46 = vmul.f32 %v1389_v56, %v981_v5 }
 0x585   :  { %v983_v17 = vadd.f32 %v1389_v56, %v982_v46 }
 0x586   :  { %v1393_v52 = vpop.eup %1392 }
 0x587   :  { %v987_v6 = vsel %vm986_vm12, %v1389_v56, %v983_v17  ;;  %v995_v21 = vmul.f32 %v1393_v52, %v978_v20  ;;  %vm1000_vm14 = vweird.f32 %v1393_v52  ;;  %v1395_v27 = vpop.eup %1394 }
 0x588   :  { %v992_v9 = vsel %vm989_vm13, %v991_v53, %v987_v6  ;;  %vm1001_vm0 = vmor %vm999_vm15, %vm1000_vm14  ;;  %v1012_v30 = vsub.f32 %v1840_v44, %v1395_v27 }
 0x589   :  { %v1013_v31 = vmul.f32 %v1011_v15, %v992_v9  ;;  %v996_v22 = vsub.f32 1.0, %v995_v21 }
 0x58b   :  { %v1015_v24 = vadd.f32 %v1391_v7, %v1013_v31  ;;  %v997_v25 = vmul.f32 %v1393_v52, %v996_v22 }
 0x58d   :  { %v998_v28 = vadd.f32 %v1393_v52, %v997_v25 }
 0x58f   :  { %v1002_v8 = vsel %vm1001_vm0, %v1393_v52, %v998_v28 }
 0x590   :  { %v1007_v32 = vsel %vm1004_vm2, %v1006_v29, %v1002_v8 }
 0x591   :  { %v1014_v33 = vmul.f32 %v1012_v30, %v1007_v32 }
 0x593   :  { %v1016_v16 = vadd.f32 %v1395_v27, %v1014_v33 }
 0x595   :  { %v1017_v34 = vpack.c.bf16 %v1016_v16, %v1015_v24 }
 0x597   :  { %1094 = vmatmul.bf16.vlgmr.msrb.gmra.mxu0 %v1017_v34 }
 0x614   :  { %v1095_v36 = vpop.f32.mrf.mxu0 }
 0x615   :  { %v1096_v38 = vadd.f32 %v1299_v35, %v1095_v36 }
 0x617   :  { %1100 = vst [vmem:[%s1893_s6] sm:$0xff] %v1096_v38 }
 0x61c   :  { %v1097_v39 = vpop.f32.mrf.mxu0 }
 0x61d   :  { %v1098_v41 = vadd.f32 %v1299_v35, %v1097_v39 }
 0x61f   :  { %1101 = vst [vmem:[%s1893_s6 + $0x8] sm:$0xff] %v1098_v41 }

</bundles_post_ra>
